<compile_context>
chip_gen: v7x
topology: tpu7x:2x2x1
jax: 0.10.0
libtpu: 0.0.40
codegen_flags: <defaults>
</compile_context>

<pallas_src>
import functools

import jax
import jax.numpy as jnp
import numpy as np
from jax.experimental import pallas as pl
from jax.experimental.pallas import tpu as pltpu


def _ebcnn_kernel(emb_ref, wl_ref, wm_ref, w1_ref, w2_ref, out_ref, feat_ref,
                  *, l, T, CB):
    E = emb_ref.shape[1]          # (possibly padded) embedding dim, mult of 8
    TB = emb_ref.shape[2]         # batch tile width (lanes), mult of 128
    n_long = T - l + 1            # MaxPool1d(31 - l) covers every conv position
    n_mid = 8 - l                 # MaxPool1d(8 - l) covers every conv position
    m0 = T - 7                    # start of the mid-term window

    # Hoist the scalar conv taps out of the loops (SMEM scalar reads).
    wl = [wl_ref[k] for k in range(l)]
    wm = [wm_ref[k] for k in range(l)]

    # Static sub-chunk loop over lane (batch) chunks: large BlockSpec tile for
    # DMA granularity, small per-chunk working set for the VPU.  Running max
    # keeps only ~3 (E, CB) slabs live — no spilled window accumulator.
    for c0 in range(0, TB, CB):
        cols = slice(c0, c0 + CB)

        def conv_max(start, n_pos, taps):
            vmax = None
            for i in range(n_pos):
                acc = taps[0] * emb_ref[start + i, :, cols]
                for k in range(1, l):
                    acc = acc + taps[k] * emb_ref[start + i + k, :, cols]
                vmax = acc if vmax is None else jnp.maximum(vmax, acc)
            return vmax

        feat_ref[0:E, cols] = conv_max(0, n_long, wl)           # long-term  vl
        feat_ref[E:2 * E, cols] = conv_max(m0, n_mid, wm)       # mid-term   vm
        feat_ref[2 * E:3 * E, cols] = emb_ref[T - 1, :, cols]   # short-term vs

    # MLP head once on the full (3E, TB) feature slab (batch stays on lanes).
    hidden = jnp.tanh(jnp.dot(w1_ref[...], feat_ref[...],
                              preferred_element_type=jnp.float32))   # (H, TB)
    out_ref[...] = jnp.dot(w2_ref[...], hidden,
                           preferred_element_type=jnp.float32)       # (1, TB)


def _round_up(x, m):
    return -(-x // m) * m


_TB_LADDER = (4096, 2048, 1024, 512, 256, 128)


def _choose_batch_tile(B, *, max_tb=4096, overhead_cols=512):
    """Pick a lane-dense batch tile: big enough to amortize the ~0.35us
    per-grid-step overhead, small enough to keep zero-padding waste low and to
    give >= 2 grid steps (v7x megacore) whenever the batch allows it."""
    best = None
    for tb in _TB_LADDER:
        if tb > max_tb:
            continue
        n_steps = -(-B // tb)
        if B > 128 and tb > 128 and n_steps < 2:
            continue                              # keep both v7x TCs busy
        cost = n_steps * (tb + overhead_cols)     # padded cols + step overhead
        if best is None or cost < best[0]:
            best = (cost, tb)
    return best[1]


@functools.partial(jax.jit, static_argnames=("l",))
def ebcnn_forward_teb(emb_teb, w_long, w_mid, w1, w2, *, l):
    """Kernel-native entry point: emb_teb is (T, E, B) (batch on lanes)."""
    T, E, B = emb_teb.shape
    H = w1.shape[0]
    assert T == 30, "EBCNN pooling constants (31-l, 8-l) require T == 30"
    assert 1 <= l <= 7, "need 1 <= l <= 7 so the mid-term conv has >= 1 output"

    emb_teb = emb_teb.astype(jnp.float32)
    wl = jnp.asarray(w_long, jnp.float32).reshape(-1)                 # (l,)
    wm = jnp.asarray(w_mid, jnp.float32).reshape(-1)                  # (l,)
    w1 = jnp.asarray(w1, jnp.float32)                                 # (H, 3E)
    w2 = jnp.asarray(w2, jnp.float32)                                 # (1, H)

    # ---- pad E to a sublane multiple: aligned (no straddling) feature writes.
    E_pad = _round_up(E, 8)
    if E_pad != E:
        emb_teb = jnp.pad(emb_teb, ((0, 0), (0, E_pad - E), (0, 0)))
        w1p = jnp.zeros((H, 3 * E_pad), jnp.float32)
        w1p = w1p.at[:, 0:E].set(w1[:, 0:E])
        w1p = w1p.at[:, E_pad:E_pad + E].set(w1[:, E:2 * E])
        w1p = w1p.at[:, 2 * E_pad:2 * E_pad + E].set(w1[:, 2 * E:3 * E])
        w1 = w1p

    # ---- pad B to a multiple of the lane tile: lane-dense, pipelined DMAs.
    TB = _choose_batch_tile(B)
    B_pad = _round_up(B, TB)
    if B_pad != B:
        emb_teb = jnp.pad(emb_teb, ((0, 0), (0, 0), (0, B_pad - B)))
    grid = (B_pad // TB,)
    CB = min(TB, 512)                      # in-kernel lane sub-chunk width

    kernel = functools.partial(_ebcnn_kernel, l=l, T=T, CB=CB)
    out = pl.pallas_call(
        kernel,
        out_shape=jax.ShapeDtypeStruct((1, B_pad), jnp.float32),
        grid=grid,
        in_specs=[
            pl.BlockSpec((T, E_pad, TB), lambda i: (0, 0, i)),       # emb tile (pipelined)
            pl.BlockSpec(memory_space=pltpu.MemorySpace.SMEM),       # w_long taps
            pl.BlockSpec(memory_space=pltpu.MemorySpace.SMEM),       # w_mid taps
            pl.BlockSpec((H, 3 * E_pad), lambda i: (0, 0)),          # w1, resident
            pl.BlockSpec((1, H), lambda i: (0, 0)),                  # w2, resident
        ],
        out_specs=pl.BlockSpec((1, TB), lambda i: (0, i)),
        scratch_shapes=[pltpu.VMEM((3 * E_pad, TB), jnp.float32)],
        compiler_params=pltpu.CompilerParams(
            dimension_semantics=("parallel",),   # shard batch tiles across TCs
            vmem_limit_bytes=32 * 1024 * 1024,   # safe on v5e/v6e/v7x
        ),
    )(emb_teb, wl, wm, w1, w2)
    return out[0, :B]                                                 # (B,)


@functools.partial(jax.jit, static_argnames=("l",))
def ebcnn_forward(emb, w_long, w_mid, w1, w2, *, l):
    """emb: (B, T, E) like the PyTorch module.  The (T,E,B) relayout stays in
    this jit region so it fuses with the emb producer when called under a
    larger jit (no standalone HBM->HBM transpose pass); callers that already
    hold emb as (T, E, B) should call ebcnn_forward_teb directly."""
    emb_teb = jnp.transpose(emb.astype(jnp.float32), (1, 2, 0))       # (T, E, B)
    return ebcnn_forward_teb(emb_teb, w_long, w_mid, w1, w2, l=l)


def _reference(emb, w_long, w_mid, w1, w2, *, l):
    """Pure-JAX reference mirroring the PyTorch forward (for a sanity check)."""
    B, T, E = emb.shape
    wl = jnp.reshape(w_long, (-1,))
    wm = jnp.reshape(w_mid, (-1,))

    def conv_pool(x_bte, w):         # x: (B, n, E), w: (l,)
        n = x_bte.shape[1]
        cols = [jnp.sum(x_bte[:, i:i + l, :] * w[None, :, None], axis=1)
                for i in range(n - l + 1)]
        return jnp.max(jnp.stack(cols, axis=0), axis=0)              # (B, E)

    vl = conv_pool(emb, wl)
    vm = conv_pool(emb[:, T - 7:, :], wm)
    vs = emb[:, T - 1, :]
    feature = jnp.concatenate([vl, vm, vs], axis=1)
    hidden = jnp.tanh(feature @ w1.T)
    return (hidden @ w2.T)[:, 0]


if __name__ == "__main__":
    # Small shapes consistent with the module: T must be 30 (pooling constants).
    B, T, E, H, L = 2, 30, 8, 32, 3

    key = jax.random.PRNGKey(0)
    k_emb, k_wl, k_wm, k_w1, k_w2, k_emb2 = jax.random.split(key, 6)

    emb = jax.random.normal(k_emb, (B, T, E), dtype=jnp.float32)

    # Conv1d weights: torch.nn.init.uniform_ -> U[0, 1); stored as (1, l).
    w_long = jax.random.uniform(k_wl, (1, L), dtype=jnp.float32)
    w_mid = jax.random.uniform(k_wm, (1, L), dtype=jnp.float32)

    # Linear weights (PyTorch layout: (out_features, in_features), no bias).
    b1 = 1.0 / np.sqrt(3 * E)
    w1 = jax.random.uniform(k_w1, (H, 3 * E), dtype=jnp.float32,
                            minval=-b1, maxval=b1)
    b2 = 1.0 / np.sqrt(H)
    w2 = jax.random.uniform(k_w2, (1, H), dtype=jnp.float32,
                            minval=-b2, maxval=b2)

    out = ebcnn_forward(emb, w_long, w_mid, w1, w2, l=L)
    out = jax.block_until_ready(out)
    ref = _reference(emb, w_long, w_mid, w1, w2, l=L)
    np.testing.assert_allclose(np.asarray(out), np.asarray(ref),
                               rtol=1e-5, atol=1e-5)

    # Second check at a batch that exercises B zero-padding, a >=2-step grid
    # (v7x megacore path) and the in-kernel 512-lane sub-chunk loop.
    B2 = 1152
    emb2 = jax.random.normal(k_emb2, (B2, T, E), dtype=jnp.float32)
    out2 = jax.block_until_ready(ebcnn_forward(emb2, w_long, w_mid, w1, w2, l=L))
    ref2 = _reference(emb2, w_long, w_mid, w1, w2, l=L)
    np.testing.assert_allclose(np.asarray(out2), np.asarray(ref2),
                               rtol=1e-5, atol=1e-5)

    print("KERNEL_OK")
</pallas_src>

<mosaic_0001>
module attributes {stable_mosaic.version = 11 : i64} {
  func.func @_ebcnn_kernel(%arg0: i32, %arg1: memref<30x8x128xf32, #tpu.memory_space<vmem>>, %arg2: memref<3xf32, #tpu.memory_space<smem>>, %arg3: memref<3xf32, #tpu.memory_space<smem>>, %arg4: memref<32x24xf32, #tpu.memory_space<vmem>>, %arg5: memref<1x32xf32, #tpu.memory_space<vmem>>, %arg6: memref<1x128xf32, #tpu.memory_space<vmem>>, %arg7: memref<24x128xf32, #tpu.memory_space<vmem>>) attributes {dimension_semantics = [#tpu.dimension_semantics<parallel>], iteration_bounds = array<i64: 1>, scalar_prefetch = 0 : i64, scratch_operands = 1 : i64, tpu.core_type = #tpu.core_type<tc>, window_params = [{transform_indices = @transform_0, window_bounds = array<i64: 30, 8, 128>}, {transform_indices = @transform_1, window_bounds = array<i64: 3>}, {transform_indices = @transform_2, window_bounds = array<i64: 3>}, {pipeline_mode = #tpu.pipeline_mode<synchronous>, transform_indices = @transform_3, window_bounds = array<i64: 32, 24>}, {pipeline_mode = #tpu.pipeline_mode<synchronous>, transform_indices = @transform_4, window_bounds = array<i64: 1, 32>}, {transform_indices = @transform_5, window_bounds = array<i64: 1, 128>}]} {
    %c0 = arith.constant 0 : index
    %0 = memref.load %arg2[%c0] : memref<3xf32, #tpu.memory_space<smem>>
    %c1 = arith.constant 1 : index
    %1 = memref.load %arg2[%c1] : memref<3xf32, #tpu.memory_space<smem>>
    %c2 = arith.constant 2 : index
    %2 = memref.load %arg2[%c2] : memref<3xf32, #tpu.memory_space<smem>>
    %c0_0 = arith.constant 0 : index
    %3 = memref.load %arg3[%c0_0] : memref<3xf32, #tpu.memory_space<smem>>
    %c1_1 = arith.constant 1 : index
    %4 = memref.load %arg3[%c1_1] : memref<3xf32, #tpu.memory_space<smem>>
    %c2_2 = arith.constant 2 : index
    %5 = memref.load %arg3[%c2_2] : memref<3xf32, #tpu.memory_space<smem>>
    %c0_3 = arith.constant 0 : index
    %c0_4 = arith.constant 0 : index
    %c0_5 = arith.constant 0 : index
    %6 = vector.load %arg1[%c0_3, %c0_4, %c0_5] : memref<30x8x128xf32, #tpu.memory_space<vmem>>, vector<1x8x128xf32>
    %7 = vector.shape_cast %6 : vector<1x8x128xf32> to vector<8x128xf32>
    %8 = vector.broadcast %0 : f32 to vector<8x128xf32>
    %9 = arith.mulf %8, %7 : vector<8x128xf32>
    %c1_6 = arith.constant 1 : index
    %c0_7 = arith.constant 0 : index
    %c0_8 = arith.constant 0 : index
    %10 = vector.load %arg1[%c1_6, %c0_7, %c0_8] : memref<30x8x128xf32, #tpu.memory_space<vmem>>, vector<1x8x128xf32>
    %11 = vector.shape_cast %10 : vector<1x8x128xf32> to vector<8x128xf32>
    %12 = vector.broadcast %1 : f32 to vector<8x128xf32>
    %13 = arith.mulf %12, %11 : vector<8x128xf32>
    %14 = arith.addf %9, %13 : vector<8x128xf32>
    %c2_9 = arith.constant 2 : index
    %c0_10 = arith.constant 0 : index
    %c0_11 = arith.constant 0 : index
    %15 = vector.load %arg1[%c2_9, %c0_10, %c0_11] : memref<30x8x128xf32, #tpu.memory_space<vmem>>, vector<1x8x128xf32>
    %16 = vector.shape_cast %15 : vector<1x8x128xf32> to vector<8x128xf32>
    %17 = vector.broadcast %2 : f32 to vector<8x128xf32>
    %18 = arith.mulf %17, %16 : vector<8x128xf32>
    %19 = arith.addf %14, %18 : vector<8x128xf32>
    %c1_12 = arith.constant 1 : index
    %c0_13 = arith.constant 0 : index
    %c0_14 = arith.constant 0 : index
    %20 = vector.load %arg1[%c1_12, %c0_13, %c0_14] : memref<30x8x128xf32, #tpu.memory_space<vmem>>, vector<1x8x128xf32>
    %21 = vector.shape_cast %20 : vector<1x8x128xf32> to vector<8x128xf32>
    %22 = vector.broadcast %0 : f32 to vector<8x128xf32>
    %23 = arith.mulf %22, %21 : vector<8x128xf32>
    %c2_15 = arith.constant 2 : index
    %c0_16 = arith.constant 0 : index
    %c0_17 = arith.constant 0 : index
    %24 = vector.load %arg1[%c2_15, %c0_16, %c0_17] : memref<30x8x128xf32, #tpu.memory_space<vmem>>, vector<1x8x128xf32>
    %25 = vector.shape_cast %24 : vector<1x8x128xf32> to vector<8x128xf32>
    %26 = vector.broadcast %1 : f32 to vector<8x128xf32>
    %27 = arith.mulf %26, %25 : vector<8x128xf32>
    %28 = arith.addf %23, %27 : vector<8x128xf32>
    %c3 = arith.constant 3 : index
    %c0_18 = arith.constant 0 : index
    %c0_19 = arith.constant 0 : index
    %29 = vector.load %arg1[%c3, %c0_18, %c0_19] : memref<30x8x128xf32, #tpu.memory_space<vmem>>, vector<1x8x128xf32>
    %30 = vector.shape_cast %29 : vector<1x8x128xf32> to vector<8x128xf32>
    %31 = vector.broadcast %2 : f32 to vector<8x128xf32>
    %32 = arith.mulf %31, %30 : vector<8x128xf32>
    %33 = arith.addf %28, %32 : vector<8x128xf32>
    %34 = arith.maximumf %19, %33 : vector<8x128xf32>
    %c2_20 = arith.constant 2 : index
    %c0_21 = arith.constant 0 : index
    %c0_22 = arith.constant 0 : index
    %35 = vector.load %arg1[%c2_20, %c0_21, %c0_22] : memref<30x8x128xf32, #tpu.memory_space<vmem>>, vector<1x8x128xf32>
    %36 = vector.shape_cast %35 : vector<1x8x128xf32> to vector<8x128xf32>
    %37 = vector.broadcast %0 : f32 to vector<8x128xf32>
    %38 = arith.mulf %37, %36 : vector<8x128xf32>
    %c3_23 = arith.constant 3 : index
    %c0_24 = arith.constant 0 : index
    %c0_25 = arith.constant 0 : index
    %39 = vector.load %arg1[%c3_23, %c0_24, %c0_25] : memref<30x8x128xf32, #tpu.memory_space<vmem>>, vector<1x8x128xf32>
    %40 = vector.shape_cast %39 : vector<1x8x128xf32> to vector<8x128xf32>
    %41 = vector.broadcast %1 : f32 to vector<8x128xf32>
    %42 = arith.mulf %41, %40 : vector<8x128xf32>
    %43 = arith.addf %38, %42 : vector<8x128xf32>
    %c4 = arith.constant 4 : index
    %c0_26 = arith.constant 0 : index
    %c0_27 = arith.constant 0 : index
    %44 = vector.load %arg1[%c4, %c0_26, %c0_27] : memref<30x8x128xf32, #tpu.memory_space<vmem>>, vector<1x8x128xf32>
    %45 = vector.shape_cast %44 : vector<1x8x128xf32> to vector<8x128xf32>
    %46 = vector.broadcast %2 : f32 to vector<8x128xf32>
    %47 = arith.mulf %46, %45 : vector<8x128xf32>
    %48 = arith.addf %43, %47 : vector<8x128xf32>
    %49 = arith.maximumf %34, %48 : vector<8x128xf32>
    %c3_28 = arith.constant 3 : index
    %c0_29 = arith.constant 0 : index
    %c0_30 = arith.constant 0 : index
    %50 = vector.load %arg1[%c3_28, %c0_29, %c0_30] : memref<30x8x128xf32, #tpu.memory_space<vmem>>, vector<1x8x128xf32>
    %51 = vector.shape_cast %50 : vector<1x8x128xf32> to vector<8x128xf32>
    %52 = vector.broadcast %0 : f32 to vector<8x128xf32>
    %53 = arith.mulf %52, %51 : vector<8x128xf32>
    %c4_31 = arith.constant 4 : index
    %c0_32 = arith.constant 0 : index
    %c0_33 = arith.constant 0 : index
    %54 = vector.load %arg1[%c4_31, %c0_32, %c0_33] : memref<30x8x128xf32, #tpu.memory_space<vmem>>, vector<1x8x128xf32>
    %55 = vector.shape_cast %54 : vector<1x8x128xf32> to vector<8x128xf32>
    %56 = vector.broadcast %1 : f32 to vector<8x128xf32>
    %57 = arith.mulf %56, %55 : vector<8x128xf32>
    %58 = arith.addf %53, %57 : vector<8x128xf32>
    %c5 = arith.constant 5 : index
    %c0_34 = arith.constant 0 : index
    %c0_35 = arith.constant 0 : index
    %59 = vector.load %arg1[%c5, %c0_34, %c0_35] : memref<30x8x128xf32, #tpu.memory_space<vmem>>, vector<1x8x128xf32>
    %60 = vector.shape_cast %59 : vector<1x8x128xf32> to vector<8x128xf32>
    %61 = vector.broadcast %2 : f32 to vector<8x128xf32>
    %62 = arith.mulf %61, %60 : vector<8x128xf32>
    %63 = arith.addf %58, %62 : vector<8x128xf32>
    %64 = arith.maximumf %49, %63 : vector<8x128xf32>
    %c4_36 = arith.constant 4 : index
    %c0_37 = arith.constant 0 : index
    %c0_38 = arith.constant 0 : index
    %65 = vector.load %arg1[%c4_36, %c0_37, %c0_38] : memref<30x8x128xf32, #tpu.memory_space<vmem>>, vector<1x8x128xf32>
    %66 = vector.shape_cast %65 : vector<1x8x128xf32> to vector<8x128xf32>
    %67 = vector.broadcast %0 : f32 to vector<8x128xf32>
    %68 = arith.mulf %67, %66 : vector<8x128xf32>
    %c5_39 = arith.constant 5 : index
    %c0_40 = arith.constant 0 : index
    %c0_41 = arith.constant 0 : index
    %69 = vector.load %arg1[%c5_39, %c0_40, %c0_41] : memref<30x8x128xf32, #tpu.memory_space<vmem>>, vector<1x8x128xf32>
    %70 = vector.shape_cast %69 : vector<1x8x128xf32> to vector<8x128xf32>
    %71 = vector.broadcast %1 : f32 to vector<8x128xf32>
    %72 = arith.mulf %71, %70 : vector<8x128xf32>
    %73 = arith.addf %68, %72 : vector<8x128xf32>
    %c6 = arith.constant 6 : index
    %c0_42 = arith.constant 0 : index
    %c0_43 = arith.constant 0 : index
    %74 = vector.load %arg1[%c6, %c0_42, %c0_43] : memref<30x8x128xf32, #tpu.memory_space<vmem>>, vector<1x8x128xf32>
    %75 = vector.shape_cast %74 : vector<1x8x128xf32> to vector<8x128xf32>
    %76 = vector.broadcast %2 : f32 to vector<8x128xf32>
    %77 = arith.mulf %76, %75 : vector<8x128xf32>
    %78 = arith.addf %73, %77 : vector<8x128xf32>
    %79 = arith.maximumf %64, %78 : vector<8x128xf32>
    %c5_44 = arith.constant 5 : index
    %c0_45 = arith.constant 0 : index
    %c0_46 = arith.constant 0 : index
    %80 = vector.load %arg1[%c5_44, %c0_45, %c0_46] : memref<30x8x128xf32, #tpu.memory_space<vmem>>, vector<1x8x128xf32>
    %81 = vector.shape_cast %80 : vector<1x8x128xf32> to vector<8x128xf32>
    %82 = vector.broadcast %0 : f32 to vector<8x128xf32>
    %83 = arith.mulf %82, %81 : vector<8x128xf32>
    %c6_47 = arith.constant 6 : index
    %c0_48 = arith.constant 0 : index
    %c0_49 = arith.constant 0 : index
    %84 = vector.load %arg1[%c6_47, %c0_48, %c0_49] : memref<30x8x128xf32, #tpu.memory_space<vmem>>, vector<1x8x128xf32>
    %85 = vector.shape_cast %84 : vector<1x8x128xf32> to vector<8x128xf32>
    %86 = vector.broadcast %1 : f32 to vector<8x128xf32>
    %87 = arith.mulf %86, %85 : vector<8x128xf32>
    %88 = arith.addf %83, %87 : vector<8x128xf32>
    %c7 = arith.constant 7 : index
    %c0_50 = arith.constant 0 : index
    %c0_51 = arith.constant 0 : index
    %89 = vector.load %arg1[%c7, %c0_50, %c0_51] : memref<30x8x128xf32, #tpu.memory_space<vmem>>, vector<1x8x128xf32>
    %90 = vector.shape_cast %89 : vector<1x8x128xf32> to vector<8x128xf32>
    %91 = vector.broadcast %2 : f32 to vector<8x128xf32>
    %92 = arith.mulf %91, %90 : vector<8x128xf32>
    %93 = arith.addf %88, %92 : vector<8x128xf32>
    %94 = arith.maximumf %79, %93 : vector<8x128xf32>
    %c6_52 = arith.constant 6 : index
    %c0_53 = arith.constant 0 : index
    %c0_54 = arith.constant 0 : index
    %95 = vector.load %arg1[%c6_52, %c0_53, %c0_54] : memref<30x8x128xf32, #tpu.memory_space<vmem>>, vector<1x8x128xf32>
    %96 = vector.shape_cast %95 : vector<1x8x128xf32> to vector<8x128xf32>
    %97 = vector.broadcast %0 : f32 to vector<8x128xf32>
    %98 = arith.mulf %97, %96 : vector<8x128xf32>
    %c7_55 = arith.constant 7 : index
    %c0_56 = arith.constant 0 : index
    %c0_57 = arith.constant 0 : index
    %99 = vector.load %arg1[%c7_55, %c0_56, %c0_57] : memref<30x8x128xf32, #tpu.memory_space<vmem>>, vector<1x8x128xf32>
    %100 = vector.shape_cast %99 : vector<1x8x128xf32> to vector<8x128xf32>
    %101 = vector.broadcast %1 : f32 to vector<8x128xf32>
    %102 = arith.mulf %101, %100 : vector<8x128xf32>
    %103 = arith.addf %98, %102 : vector<8x128xf32>
    %c8 = arith.constant 8 : index
    %c0_58 = arith.constant 0 : index
    %c0_59 = arith.constant 0 : index
    %104 = vector.load %arg1[%c8, %c0_58, %c0_59] : memref<30x8x128xf32, #tpu.memory_space<vmem>>, vector<1x8x128xf32>
    %105 = vector.shape_cast %104 : vector<1x8x128xf32> to vector<8x128xf32>
    %106 = vector.broadcast %2 : f32 to vector<8x128xf32>
    %107 = arith.mulf %106, %105 : vector<8x128xf32>
    %108 = arith.addf %103, %107 : vector<8x128xf32>
    %109 = arith.maximumf %94, %108 : vector<8x128xf32>
    %c7_60 = arith.constant 7 : index
    %c0_61 = arith.constant 0 : index
    %c0_62 = arith.constant 0 : index
    %110 = vector.load %arg1[%c7_60, %c0_61, %c0_62] : memref<30x8x128xf32, #tpu.memory_space<vmem>>, vector<1x8x128xf32>
    %111 = vector.shape_cast %110 : vector<1x8x128xf32> to vector<8x128xf32>
    %112 = vector.broadcast %0 : f32 to vector<8x128xf32>
    %113 = arith.mulf %112, %111 : vector<8x128xf32>
    %c8_63 = arith.constant 8 : index
    %c0_64 = arith.constant 0 : index
    %c0_65 = arith.constant 0 : index
    %114 = vector.load %arg1[%c8_63, %c0_64, %c0_65] : memref<30x8x128xf32, #tpu.memory_space<vmem>>, vector<1x8x128xf32>
    %115 = vector.shape_cast %114 : vector<1x8x128xf32> to vector<8x128xf32>
    %116 = vector.broadcast %1 : f32 to vector<8x128xf32>
    %117 = arith.mulf %116, %115 : vector<8x128xf32>
    %118 = arith.addf %113, %117 : vector<8x128xf32>
    %c9 = arith.constant 9 : index
    %c0_66 = arith.constant 0 : index
    %c0_67 = arith.constant 0 : index
    %119 = vector.load %arg1[%c9, %c0_66, %c0_67] : memref<30x8x128xf32, #tpu.memory_space<vmem>>, vector<1x8x128xf32>
    %120 = vector.shape_cast %119 : vector<1x8x128xf32> to vector<8x128xf32>
    %121 = vector.broadcast %2 : f32 to vector<8x128xf32>
    %122 = arith.mulf %121, %120 : vector<8x128xf32>
    %123 = arith.addf %118, %122 : vector<8x128xf32>
    %124 = arith.maximumf %109, %123 : vector<8x128xf32>
    %c8_68 = arith.constant 8 : index
    %c0_69 = arith.constant 0 : index
    %c0_70 = arith.constant 0 : index
    %125 = vector.load %arg1[%c8_68, %c0_69, %c0_70] : memref<30x8x128xf32, #tpu.memory_space<vmem>>, vector<1x8x128xf32>
    %126 = vector.shape_cast %125 : vector<1x8x128xf32> to vector<8x128xf32>
    %127 = vector.broadcast %0 : f32 to vector<8x128xf32>
    %128 = arith.mulf %127, %126 : vector<8x128xf32>
    %c9_71 = arith.constant 9 : index
    %c0_72 = arith.constant 0 : index
    %c0_73 = arith.constant 0 : index
    %129 = vector.load %arg1[%c9_71, %c0_72, %c0_73] : memref<30x8x128xf32, #tpu.memory_space<vmem>>, vector<1x8x128xf32>
    %130 = vector.shape_cast %129 : vector<1x8x128xf32> to vector<8x128xf32>
    %131 = vector.broadcast %1 : f32 to vector<8x128xf32>
    %132 = arith.mulf %131, %130 : vector<8x128xf32>
    %133 = arith.addf %128, %132 : vector<8x128xf32>
    %c10 = arith.constant 10 : index
    %c0_74 = arith.constant 0 : index
    %c0_75 = arith.constant 0 : index
    %134 = vector.load %arg1[%c10, %c0_74, %c0_75] : memref<30x8x128xf32, #tpu.memory_space<vmem>>, vector<1x8x128xf32>
    %135 = vector.shape_cast %134 : vector<1x8x128xf32> to vector<8x128xf32>
    %136 = vector.broadcast %2 : f32 to vector<8x128xf32>
    %137 = arith.mulf %136, %135 : vector<8x128xf32>
    %138 = arith.addf %133, %137 : vector<8x128xf32>
    %139 = arith.maximumf %124, %138 : vector<8x128xf32>
    %c9_76 = arith.constant 9 : index
    %c0_77 = arith.constant 0 : index
    %c0_78 = arith.constant 0 : index
    %140 = vector.load %arg1[%c9_76, %c0_77, %c0_78] : memref<30x8x128xf32, #tpu.memory_space<vmem>>, vector<1x8x128xf32>
    %141 = vector.shape_cast %140 : vector<1x8x128xf32> to vector<8x128xf32>
    %142 = vector.broadcast %0 : f32 to vector<8x128xf32>
    %143 = arith.mulf %142, %141 : vector<8x128xf32>
    %c10_79 = arith.constant 10 : index
    %c0_80 = arith.constant 0 : index
    %c0_81 = arith.constant 0 : index
    %144 = vector.load %arg1[%c10_79, %c0_80, %c0_81] : memref<30x8x128xf32, #tpu.memory_space<vmem>>, vector<1x8x128xf32>
    %145 = vector.shape_cast %144 : vector<1x8x128xf32> to vector<8x128xf32>
    %146 = vector.broadcast %1 : f32 to vector<8x128xf32>
    %147 = arith.mulf %146, %145 : vector<8x128xf32>
    %148 = arith.addf %143, %147 : vector<8x128xf32>
    %c11 = arith.constant 11 : index
    %c0_82 = arith.constant 0 : index
    %c0_83 = arith.constant 0 : index
    %149 = vector.load %arg1[%c11, %c0_82, %c0_83] : memref<30x8x128xf32, #tpu.memory_space<vmem>>, vector<1x8x128xf32>
    %150 = vector.shape_cast %149 : vector<1x8x128xf32> to vector<8x128xf32>
    %151 = vector.broadcast %2 : f32 to vector<8x128xf32>
    %152 = arith.mulf %151, %150 : vector<8x128xf32>
    %153 = arith.addf %148, %152 : vector<8x128xf32>
    %154 = arith.maximumf %139, %153 : vector<8x128xf32>
    %c10_84 = arith.constant 10 : index
    %c0_85 = arith.constant 0 : index
    %c0_86 = arith.constant 0 : index
    %155 = vector.load %arg1[%c10_84, %c0_85, %c0_86] : memref<30x8x128xf32, #tpu.memory_space<vmem>>, vector<1x8x128xf32>
    %156 = vector.shape_cast %155 : vector<1x8x128xf32> to vector<8x128xf32>
    %157 = vector.broadcast %0 : f32 to vector<8x128xf32>
    %158 = arith.mulf %157, %156 : vector<8x128xf32>
    %c11_87 = arith.constant 11 : index
    %c0_88 = arith.constant 0 : index
    %c0_89 = arith.constant 0 : index
    %159 = vector.load %arg1[%c11_87, %c0_88, %c0_89] : memref<30x8x128xf32, #tpu.memory_space<vmem>>, vector<1x8x128xf32>
    %160 = vector.shape_cast %159 : vector<1x8x128xf32> to vector<8x128xf32>
    %161 = vector.broadcast %1 : f32 to vector<8x128xf32>
    %162 = arith.mulf %161, %160 : vector<8x128xf32>
    %163 = arith.addf %158, %162 : vector<8x128xf32>
    %c12 = arith.constant 12 : index
    %c0_90 = arith.constant 0 : index
    %c0_91 = arith.constant 0 : index
    %164 = vector.load %arg1[%c12, %c0_90, %c0_91] : memref<30x8x128xf32, #tpu.memory_space<vmem>>, vector<1x8x128xf32>
    %165 = vector.shape_cast %164 : vector<1x8x128xf32> to vector<8x128xf32>
    %166 = vector.broadcast %2 : f32 to vector<8x128xf32>
    %167 = arith.mulf %166, %165 : vector<8x128xf32>
    %168 = arith.addf %163, %167 : vector<8x128xf32>
    %169 = arith.maximumf %154, %168 : vector<8x128xf32>
    %c11_92 = arith.constant 11 : index
    %c0_93 = arith.constant 0 : index
    %c0_94 = arith.constant 0 : index
    %170 = vector.load %arg1[%c11_92, %c0_93, %c0_94] : memref<30x8x128xf32, #tpu.memory_space<vmem>>, vector<1x8x128xf32>
    %171 = vector.shape_cast %170 : vector<1x8x128xf32> to vector<8x128xf32>
    %172 = vector.broadcast %0 : f32 to vector<8x128xf32>
    %173 = arith.mulf %172, %171 : vector<8x128xf32>
    %c12_95 = arith.constant 12 : index
    %c0_96 = arith.constant 0 : index
    %c0_97 = arith.constant 0 : index
    %174 = vector.load %arg1[%c12_95, %c0_96, %c0_97] : memref<30x8x128xf32, #tpu.memory_space<vmem>>, vector<1x8x128xf32>
    %175 = vector.shape_cast %174 : vector<1x8x128xf32> to vector<8x128xf32>
    %176 = vector.broadcast %1 : f32 to vector<8x128xf32>
    %177 = arith.mulf %176, %175 : vector<8x128xf32>
    %178 = arith.addf %173, %177 : vector<8x128xf32>
    %c13 = arith.constant 13 : index
    %c0_98 = arith.constant 0 : index
    %c0_99 = arith.constant 0 : index
    %179 = vector.load %arg1[%c13, %c0_98, %c0_99] : memref<30x8x128xf32, #tpu.memory_space<vmem>>, vector<1x8x128xf32>
    %180 = vector.shape_cast %179 : vector<1x8x128xf32> to vector<8x128xf32>
    %181 = vector.broadcast %2 : f32 to vector<8x128xf32>
    %182 = arith.mulf %181, %180 : vector<8x128xf32>
    %183 = arith.addf %178, %182 : vector<8x128xf32>
    %184 = arith.maximumf %169, %183 : vector<8x128xf32>
    %c12_100 = arith.constant 12 : index
    %c0_101 = arith.constant 0 : index
    %c0_102 = arith.constant 0 : index
    %185 = vector.load %arg1[%c12_100, %c0_101, %c0_102] : memref<30x8x128xf32, #tpu.memory_space<vmem>>, vector<1x8x128xf32>
    %186 = vector.shape_cast %185 : vector<1x8x128xf32> to vector<8x128xf32>
    %187 = vector.broadcast %0 : f32 to vector<8x128xf32>
    %188 = arith.mulf %187, %186 : vector<8x128xf32>
    %c13_103 = arith.constant 13 : index
    %c0_104 = arith.constant 0 : index
    %c0_105 = arith.constant 0 : index
    %189 = vector.load %arg1[%c13_103, %c0_104, %c0_105] : memref<30x8x128xf32, #tpu.memory_space<vmem>>, vector<1x8x128xf32>
    %190 = vector.shape_cast %189 : vector<1x8x128xf32> to vector<8x128xf32>
    %191 = vector.broadcast %1 : f32 to vector<8x128xf32>
    %192 = arith.mulf %191, %190 : vector<8x128xf32>
    %193 = arith.addf %188, %192 : vector<8x128xf32>
    %c14 = arith.constant 14 : index
    %c0_106 = arith.constant 0 : index
    %c0_107 = arith.constant 0 : index
    %194 = vector.load %arg1[%c14, %c0_106, %c0_107] : memref<30x8x128xf32, #tpu.memory_space<vmem>>, vector<1x8x128xf32>
    %195 = vector.shape_cast %194 : vector<1x8x128xf32> to vector<8x128xf32>
    %196 = vector.broadcast %2 : f32 to vector<8x128xf32>
    %197 = arith.mulf %196, %195 : vector<8x128xf32>
    %198 = arith.addf %193, %197 : vector<8x128xf32>
    %199 = arith.maximumf %184, %198 : vector<8x128xf32>
    %c13_108 = arith.constant 13 : index
    %c0_109 = arith.constant 0 : index
    %c0_110 = arith.constant 0 : index
    %200 = vector.load %arg1[%c13_108, %c0_109, %c0_110] : memref<30x8x128xf32, #tpu.memory_space<vmem>>, vector<1x8x128xf32>
    %201 = vector.shape_cast %200 : vector<1x8x128xf32> to vector<8x128xf32>
    %202 = vector.broadcast %0 : f32 to vector<8x128xf32>
    %203 = arith.mulf %202, %201 : vector<8x128xf32>
    %c14_111 = arith.constant 14 : index
    %c0_112 = arith.constant 0 : index
    %c0_113 = arith.constant 0 : index
    %204 = vector.load %arg1[%c14_111, %c0_112, %c0_113] : memref<30x8x128xf32, #tpu.memory_space<vmem>>, vector<1x8x128xf32>
    %205 = vector.shape_cast %204 : vector<1x8x128xf32> to vector<8x128xf32>
    %206 = vector.broadcast %1 : f32 to vector<8x128xf32>
    %207 = arith.mulf %206, %205 : vector<8x128xf32>
    %208 = arith.addf %203, %207 : vector<8x128xf32>
    %c15 = arith.constant 15 : index
    %c0_114 = arith.constant 0 : index
    %c0_115 = arith.constant 0 : index
    %209 = vector.load %arg1[%c15, %c0_114, %c0_115] : memref<30x8x128xf32, #tpu.memory_space<vmem>>, vector<1x8x128xf32>
    %210 = vector.shape_cast %209 : vector<1x8x128xf32> to vector<8x128xf32>
    %211 = vector.broadcast %2 : f32 to vector<8x128xf32>
    %212 = arith.mulf %211, %210 : vector<8x128xf32>
    %213 = arith.addf %208, %212 : vector<8x128xf32>
    %214 = arith.maximumf %199, %213 : vector<8x128xf32>
    %c14_116 = arith.constant 14 : index
    %c0_117 = arith.constant 0 : index
    %c0_118 = arith.constant 0 : index
    %215 = vector.load %arg1[%c14_116, %c0_117, %c0_118] : memref<30x8x128xf32, #tpu.memory_space<vmem>>, vector<1x8x128xf32>
    %216 = vector.shape_cast %215 : vector<1x8x128xf32> to vector<8x128xf32>
    %217 = vector.broadcast %0 : f32 to vector<8x128xf32>
    %218 = arith.mulf %217, %216 : vector<8x128xf32>
    %c15_119 = arith.constant 15 : index
    %c0_120 = arith.constant 0 : index
    %c0_121 = arith.constant 0 : index
    %219 = vector.load %arg1[%c15_119, %c0_120, %c0_121] : memref<30x8x128xf32, #tpu.memory_space<vmem>>, vector<1x8x128xf32>
    %220 = vector.shape_cast %219 : vector<1x8x128xf32> to vector<8x128xf32>
    %221 = vector.broadcast %1 : f32 to vector<8x128xf32>
    %222 = arith.mulf %221, %220 : vector<8x128xf32>
    %223 = arith.addf %218, %222 : vector<8x128xf32>
    %c16 = arith.constant 16 : index
    %c0_122 = arith.constant 0 : index
    %c0_123 = arith.constant 0 : index
    %224 = vector.load %arg1[%c16, %c0_122, %c0_123] : memref<30x8x128xf32, #tpu.memory_space<vmem>>, vector<1x8x128xf32>
    %225 = vector.shape_cast %224 : vector<1x8x128xf32> to vector<8x128xf32>
    %226 = vector.broadcast %2 : f32 to vector<8x128xf32>
    %227 = arith.mulf %226, %225 : vector<8x128xf32>
    %228 = arith.addf %223, %227 : vector<8x128xf32>
    %229 = arith.maximumf %214, %228 : vector<8x128xf32>
    %c15_124 = arith.constant 15 : index
    %c0_125 = arith.constant 0 : index
    %c0_126 = arith.constant 0 : index
    %230 = vector.load %arg1[%c15_124, %c0_125, %c0_126] : memref<30x8x128xf32, #tpu.memory_space<vmem>>, vector<1x8x128xf32>
    %231 = vector.shape_cast %230 : vector<1x8x128xf32> to vector<8x128xf32>
    %232 = vector.broadcast %0 : f32 to vector<8x128xf32>
    %233 = arith.mulf %232, %231 : vector<8x128xf32>
    %c16_127 = arith.constant 16 : index
    %c0_128 = arith.constant 0 : index
    %c0_129 = arith.constant 0 : index
    %234 = vector.load %arg1[%c16_127, %c0_128, %c0_129] : memref<30x8x128xf32, #tpu.memory_space<vmem>>, vector<1x8x128xf32>
    %235 = vector.shape_cast %234 : vector<1x8x128xf32> to vector<8x128xf32>
    %236 = vector.broadcast %1 : f32 to vector<8x128xf32>
    %237 = arith.mulf %236, %235 : vector<8x128xf32>
    %238 = arith.addf %233, %237 : vector<8x128xf32>
    %c17 = arith.constant 17 : index
    %c0_130 = arith.constant 0 : index
    %c0_131 = arith.constant 0 : index
    %239 = vector.load %arg1[%c17, %c0_130, %c0_131] : memref<30x8x128xf32, #tpu.memory_space<vmem>>, vector<1x8x128xf32>
    %240 = vector.shape_cast %239 : vector<1x8x128xf32> to vector<8x128xf32>
    %241 = vector.broadcast %2 : f32 to vector<8x128xf32>
    %242 = arith.mulf %241, %240 : vector<8x128xf32>
    %243 = arith.addf %238, %242 : vector<8x128xf32>
    %244 = arith.maximumf %229, %243 : vector<8x128xf32>
    %c16_132 = arith.constant 16 : index
    %c0_133 = arith.constant 0 : index
    %c0_134 = arith.constant 0 : index
    %245 = vector.load %arg1[%c16_132, %c0_133, %c0_134] : memref<30x8x128xf32, #tpu.memory_space<vmem>>, vector<1x8x128xf32>
    %246 = vector.shape_cast %245 : vector<1x8x128xf32> to vector<8x128xf32>
    %247 = vector.broadcast %0 : f32 to vector<8x128xf32>
    %248 = arith.mulf %247, %246 : vector<8x128xf32>
    %c17_135 = arith.constant 17 : index
    %c0_136 = arith.constant 0 : index
    %c0_137 = arith.constant 0 : index
    %249 = vector.load %arg1[%c17_135, %c0_136, %c0_137] : memref<30x8x128xf32, #tpu.memory_space<vmem>>, vector<1x8x128xf32>
    %250 = vector.shape_cast %249 : vector<1x8x128xf32> to vector<8x128xf32>
    %251 = vector.broadcast %1 : f32 to vector<8x128xf32>
    %252 = arith.mulf %251, %250 : vector<8x128xf32>
    %253 = arith.addf %248, %252 : vector<8x128xf32>
    %c18 = arith.constant 18 : index
    %c0_138 = arith.constant 0 : index
    %c0_139 = arith.constant 0 : index
    %254 = vector.load %arg1[%c18, %c0_138, %c0_139] : memref<30x8x128xf32, #tpu.memory_space<vmem>>, vector<1x8x128xf32>
    %255 = vector.shape_cast %254 : vector<1x8x128xf32> to vector<8x128xf32>
    %256 = vector.broadcast %2 : f32 to vector<8x128xf32>
    %257 = arith.mulf %256, %255 : vector<8x128xf32>
    %258 = arith.addf %253, %257 : vector<8x128xf32>
    %259 = arith.maximumf %244, %258 : vector<8x128xf32>
    %c17_140 = arith.constant 17 : index
    %c0_141 = arith.constant 0 : index
    %c0_142 = arith.constant 0 : index
    %260 = vector.load %arg1[%c17_140, %c0_141, %c0_142] : memref<30x8x128xf32, #tpu.memory_space<vmem>>, vector<1x8x128xf32>
    %261 = vector.shape_cast %260 : vector<1x8x128xf32> to vector<8x128xf32>
    %262 = vector.broadcast %0 : f32 to vector<8x128xf32>
    %263 = arith.mulf %262, %261 : vector<8x128xf32>
    %c18_143 = arith.constant 18 : index
    %c0_144 = arith.constant 0 : index
    %c0_145 = arith.constant 0 : index
    %264 = vector.load %arg1[%c18_143, %c0_144, %c0_145] : memref<30x8x128xf32, #tpu.memory_space<vmem>>, vector<1x8x128xf32>
    %265 = vector.shape_cast %264 : vector<1x8x128xf32> to vector<8x128xf32>
    %266 = vector.broadcast %1 : f32 to vector<8x128xf32>
    %267 = arith.mulf %266, %265 : vector<8x128xf32>
    %268 = arith.addf %263, %267 : vector<8x128xf32>
    %c19 = arith.constant 19 : index
    %c0_146 = arith.constant 0 : index
    %c0_147 = arith.constant 0 : index
    %269 = vector.load %arg1[%c19, %c0_146, %c0_147] : memref<30x8x128xf32, #tpu.memory_space<vmem>>, vector<1x8x128xf32>
    %270 = vector.shape_cast %269 : vector<1x8x128xf32> to vector<8x128xf32>
    %271 = vector.broadcast %2 : f32 to vector<8x128xf32>
    %272 = arith.mulf %271, %270 : vector<8x128xf32>
    %273 = arith.addf %268, %272 : vector<8x128xf32>
    %274 = arith.maximumf %259, %273 : vector<8x128xf32>
    %c18_148 = arith.constant 18 : index
    %c0_149 = arith.constant 0 : index
    %c0_150 = arith.constant 0 : index
    %275 = vector.load %arg1[%c18_148, %c0_149, %c0_150] : memref<30x8x128xf32, #tpu.memory_space<vmem>>, vector<1x8x128xf32>
    %276 = vector.shape_cast %275 : vector<1x8x128xf32> to vector<8x128xf32>
    %277 = vector.broadcast %0 : f32 to vector<8x128xf32>
    %278 = arith.mulf %277, %276 : vector<8x128xf32>
    %c19_151 = arith.constant 19 : index
    %c0_152 = arith.constant 0 : index
    %c0_153 = arith.constant 0 : index
    %279 = vector.load %arg1[%c19_151, %c0_152, %c0_153] : memref<30x8x128xf32, #tpu.memory_space<vmem>>, vector<1x8x128xf32>
    %280 = vector.shape_cast %279 : vector<1x8x128xf32> to vector<8x128xf32>
    %281 = vector.broadcast %1 : f32 to vector<8x128xf32>
    %282 = arith.mulf %281, %280 : vector<8x128xf32>
    %283 = arith.addf %278, %282 : vector<8x128xf32>
    %c20 = arith.constant 20 : index
    %c0_154 = arith.constant 0 : index
    %c0_155 = arith.constant 0 : index
    %284 = vector.load %arg1[%c20, %c0_154, %c0_155] : memref<30x8x128xf32, #tpu.memory_space<vmem>>, vector<1x8x128xf32>
    %285 = vector.shape_cast %284 : vector<1x8x128xf32> to vector<8x128xf32>
    %286 = vector.broadcast %2 : f32 to vector<8x128xf32>
    %287 = arith.mulf %286, %285 : vector<8x128xf32>
    %288 = arith.addf %283, %287 : vector<8x128xf32>
    %289 = arith.maximumf %274, %288 : vector<8x128xf32>
    %c19_156 = arith.constant 19 : index
    %c0_157 = arith.constant 0 : index
    %c0_158 = arith.constant 0 : index
    %290 = vector.load %arg1[%c19_156, %c0_157, %c0_158] : memref<30x8x128xf32, #tpu.memory_space<vmem>>, vector<1x8x128xf32>
    %291 = vector.shape_cast %290 : vector<1x8x128xf32> to vector<8x128xf32>
    %292 = vector.broadcast %0 : f32 to vector<8x128xf32>
    %293 = arith.mulf %292, %291 : vector<8x128xf32>
    %c20_159 = arith.constant 20 : index
    %c0_160 = arith.constant 0 : index
    %c0_161 = arith.constant 0 : index
    %294 = vector.load %arg1[%c20_159, %c0_160, %c0_161] : memref<30x8x128xf32, #tpu.memory_space<vmem>>, vector<1x8x128xf32>
    %295 = vector.shape_cast %294 : vector<1x8x128xf32> to vector<8x128xf32>
    %296 = vector.broadcast %1 : f32 to vector<8x128xf32>
    %297 = arith.mulf %296, %295 : vector<8x128xf32>
    %298 = arith.addf %293, %297 : vector<8x128xf32>
    %c21 = arith.constant 21 : index
    %c0_162 = arith.constant 0 : index
    %c0_163 = arith.constant 0 : index
    %299 = vector.load %arg1[%c21, %c0_162, %c0_163] : memref<30x8x128xf32, #tpu.memory_space<vmem>>, vector<1x8x128xf32>
    %300 = vector.shape_cast %299 : vector<1x8x128xf32> to vector<8x128xf32>
    %301 = vector.broadcast %2 : f32 to vector<8x128xf32>
    %302 = arith.mulf %301, %300 : vector<8x128xf32>
    %303 = arith.addf %298, %302 : vector<8x128xf32>
    %304 = arith.maximumf %289, %303 : vector<8x128xf32>
    %c20_164 = arith.constant 20 : index
    %c0_165 = arith.constant 0 : index
    %c0_166 = arith.constant 0 : index
    %305 = vector.load %arg1[%c20_164, %c0_165, %c0_166] : memref<30x8x128xf32, #tpu.memory_space<vmem>>, vector<1x8x128xf32>
    %306 = vector.shape_cast %305 : vector<1x8x128xf32> to vector<8x128xf32>
    %307 = vector.broadcast %0 : f32 to vector<8x128xf32>
    %308 = arith.mulf %307, %306 : vector<8x128xf32>
    %c21_167 = arith.constant 21 : index
    %c0_168 = arith.constant 0 : index
    %c0_169 = arith.constant 0 : index
    %309 = vector.load %arg1[%c21_167, %c0_168, %c0_169] : memref<30x8x128xf32, #tpu.memory_space<vmem>>, vector<1x8x128xf32>
    %310 = vector.shape_cast %309 : vector<1x8x128xf32> to vector<8x128xf32>
    %311 = vector.broadcast %1 : f32 to vector<8x128xf32>
    %312 = arith.mulf %311, %310 : vector<8x128xf32>
    %313 = arith.addf %308, %312 : vector<8x128xf32>
    %c22 = arith.constant 22 : index
    %c0_170 = arith.constant 0 : index
    %c0_171 = arith.constant 0 : index
    %314 = vector.load %arg1[%c22, %c0_170, %c0_171] : memref<30x8x128xf32, #tpu.memory_space<vmem>>, vector<1x8x128xf32>
    %315 = vector.shape_cast %314 : vector<1x8x128xf32> to vector<8x128xf32>
    %316 = vector.broadcast %2 : f32 to vector<8x128xf32>
    %317 = arith.mulf %316, %315 : vector<8x128xf32>
    %318 = arith.addf %313, %317 : vector<8x128xf32>
    %319 = arith.maximumf %304, %318 : vector<8x128xf32>
    %c21_172 = arith.constant 21 : index
    %c0_173 = arith.constant 0 : index
    %c0_174 = arith.constant 0 : index
    %320 = vector.load %arg1[%c21_172, %c0_173, %c0_174] : memref<30x8x128xf32, #tpu.memory_space<vmem>>, vector<1x8x128xf32>
    %321 = vector.shape_cast %320 : vector<1x8x128xf32> to vector<8x128xf32>
    %322 = vector.broadcast %0 : f32 to vector<8x128xf32>
    %323 = arith.mulf %322, %321 : vector<8x128xf32>
    %c22_175 = arith.constant 22 : index
    %c0_176 = arith.constant 0 : index
    %c0_177 = arith.constant 0 : index
    %324 = vector.load %arg1[%c22_175, %c0_176, %c0_177] : memref<30x8x128xf32, #tpu.memory_space<vmem>>, vector<1x8x128xf32>
    %325 = vector.shape_cast %324 : vector<1x8x128xf32> to vector<8x128xf32>
    %326 = vector.broadcast %1 : f32 to vector<8x128xf32>
    %327 = arith.mulf %326, %325 : vector<8x128xf32>
    %328 = arith.addf %323, %327 : vector<8x128xf32>
    %c23 = arith.constant 23 : index
    %c0_178 = arith.constant 0 : index
    %c0_179 = arith.constant 0 : index
    %329 = vector.load %arg1[%c23, %c0_178, %c0_179] : memref<30x8x128xf32, #tpu.memory_space<vmem>>, vector<1x8x128xf32>
    %330 = vector.shape_cast %329 : vector<1x8x128xf32> to vector<8x128xf32>
    %331 = vector.broadcast %2 : f32 to vector<8x128xf32>
    %332 = arith.mulf %331, %330 : vector<8x128xf32>
    %333 = arith.addf %328, %332 : vector<8x128xf32>
    %334 = arith.maximumf %319, %333 : vector<8x128xf32>
    %c22_180 = arith.constant 22 : index
    %c0_181 = arith.constant 0 : index
    %c0_182 = arith.constant 0 : index
    %335 = vector.load %arg1[%c22_180, %c0_181, %c0_182] : memref<30x8x128xf32, #tpu.memory_space<vmem>>, vector<1x8x128xf32>
    %336 = vector.shape_cast %335 : vector<1x8x128xf32> to vector<8x128xf32>
    %337 = vector.broadcast %0 : f32 to vector<8x128xf32>
    %338 = arith.mulf %337, %336 : vector<8x128xf32>
    %c23_183 = arith.constant 23 : index
    %c0_184 = arith.constant 0 : index
    %c0_185 = arith.constant 0 : index
    %339 = vector.load %arg1[%c23_183, %c0_184, %c0_185] : memref<30x8x128xf32, #tpu.memory_space<vmem>>, vector<1x8x128xf32>
    %340 = vector.shape_cast %339 : vector<1x8x128xf32> to vector<8x128xf32>
    %341 = vector.broadcast %1 : f32 to vector<8x128xf32>
    %342 = arith.mulf %341, %340 : vector<8x128xf32>
    %343 = arith.addf %338, %342 : vector<8x128xf32>
    %c24 = arith.constant 24 : index
    %c0_186 = arith.constant 0 : index
    %c0_187 = arith.constant 0 : index
    %344 = vector.load %arg1[%c24, %c0_186, %c0_187] : memref<30x8x128xf32, #tpu.memory_space<vmem>>, vector<1x8x128xf32>
    %345 = vector.shape_cast %344 : vector<1x8x128xf32> to vector<8x128xf32>
    %346 = vector.broadcast %2 : f32 to vector<8x128xf32>
    %347 = arith.mulf %346, %345 : vector<8x128xf32>
    %348 = arith.addf %343, %347 : vector<8x128xf32>
    %349 = arith.maximumf %334, %348 : vector<8x128xf32>
    %c23_188 = arith.constant 23 : index
    %c0_189 = arith.constant 0 : index
    %c0_190 = arith.constant 0 : index
    %350 = vector.load %arg1[%c23_188, %c0_189, %c0_190] : memref<30x8x128xf32, #tpu.memory_space<vmem>>, vector<1x8x128xf32>
    %351 = vector.shape_cast %350 : vector<1x8x128xf32> to vector<8x128xf32>
    %352 = vector.broadcast %0 : f32 to vector<8x128xf32>
    %353 = arith.mulf %352, %351 : vector<8x128xf32>
    %c24_191 = arith.constant 24 : index
    %c0_192 = arith.constant 0 : index
    %c0_193 = arith.constant 0 : index
    %354 = vector.load %arg1[%c24_191, %c0_192, %c0_193] : memref<30x8x128xf32, #tpu.memory_space<vmem>>, vector<1x8x128xf32>
    %355 = vector.shape_cast %354 : vector<1x8x128xf32> to vector<8x128xf32>
    %356 = vector.broadcast %1 : f32 to vector<8x128xf32>
    %357 = arith.mulf %356, %355 : vector<8x128xf32>
    %358 = arith.addf %353, %357 : vector<8x128xf32>
    %c25 = arith.constant 25 : index
    %c0_194 = arith.constant 0 : index
    %c0_195 = arith.constant 0 : index
    %359 = vector.load %arg1[%c25, %c0_194, %c0_195] : memref<30x8x128xf32, #tpu.memory_space<vmem>>, vector<1x8x128xf32>
    %360 = vector.shape_cast %359 : vector<1x8x128xf32> to vector<8x128xf32>
    %361 = vector.broadcast %2 : f32 to vector<8x128xf32>
    %362 = arith.mulf %361, %360 : vector<8x128xf32>
    %363 = arith.addf %358, %362 : vector<8x128xf32>
    %364 = arith.maximumf %349, %363 : vector<8x128xf32>
    %c24_196 = arith.constant 24 : index
    %c0_197 = arith.constant 0 : index
    %c0_198 = arith.constant 0 : index
    %365 = vector.load %arg1[%c24_196, %c0_197, %c0_198] : memref<30x8x128xf32, #tpu.memory_space<vmem>>, vector<1x8x128xf32>
    %366 = vector.shape_cast %365 : vector<1x8x128xf32> to vector<8x128xf32>
    %367 = vector.broadcast %0 : f32 to vector<8x128xf32>
    %368 = arith.mulf %367, %366 : vector<8x128xf32>
    %c25_199 = arith.constant 25 : index
    %c0_200 = arith.constant 0 : index
    %c0_201 = arith.constant 0 : index
    %369 = vector.load %arg1[%c25_199, %c0_200, %c0_201] : memref<30x8x128xf32, #tpu.memory_space<vmem>>, vector<1x8x128xf32>
    %370 = vector.shape_cast %369 : vector<1x8x128xf32> to vector<8x128xf32>
    %371 = vector.broadcast %1 : f32 to vector<8x128xf32>
    %372 = arith.mulf %371, %370 : vector<8x128xf32>
    %373 = arith.addf %368, %372 : vector<8x128xf32>
    %c26 = arith.constant 26 : index
    %c0_202 = arith.constant 0 : index
    %c0_203 = arith.constant 0 : index
    %374 = vector.load %arg1[%c26, %c0_202, %c0_203] : memref<30x8x128xf32, #tpu.memory_space<vmem>>, vector<1x8x128xf32>
    %375 = vector.shape_cast %374 : vector<1x8x128xf32> to vector<8x128xf32>
    %376 = vector.broadcast %2 : f32 to vector<8x128xf32>
    %377 = arith.mulf %376, %375 : vector<8x128xf32>
    %378 = arith.addf %373, %377 : vector<8x128xf32>
    %379 = arith.maximumf %364, %378 : vector<8x128xf32>
    %c25_204 = arith.constant 25 : index
    %c0_205 = arith.constant 0 : index
    %c0_206 = arith.constant 0 : index
    %380 = vector.load %arg1[%c25_204, %c0_205, %c0_206] : memref<30x8x128xf32, #tpu.memory_space<vmem>>, vector<1x8x128xf32>
    %381 = vector.shape_cast %380 : vector<1x8x128xf32> to vector<8x128xf32>
    %382 = vector.broadcast %0 : f32 to vector<8x128xf32>
    %383 = arith.mulf %382, %381 : vector<8x128xf32>
    %c26_207 = arith.constant 26 : index
    %c0_208 = arith.constant 0 : index
    %c0_209 = arith.constant 0 : index
    %384 = vector.load %arg1[%c26_207, %c0_208, %c0_209] : memref<30x8x128xf32, #tpu.memory_space<vmem>>, vector<1x8x128xf32>
    %385 = vector.shape_cast %384 : vector<1x8x128xf32> to vector<8x128xf32>
    %386 = vector.broadcast %1 : f32 to vector<8x128xf32>
    %387 = arith.mulf %386, %385 : vector<8x128xf32>
    %388 = arith.addf %383, %387 : vector<8x128xf32>
    %c27 = arith.constant 27 : index
    %c0_210 = arith.constant 0 : index
    %c0_211 = arith.constant 0 : index
    %389 = vector.load %arg1[%c27, %c0_210, %c0_211] : memref<30x8x128xf32, #tpu.memory_space<vmem>>, vector<1x8x128xf32>
    %390 = vector.shape_cast %389 : vector<1x8x128xf32> to vector<8x128xf32>
    %391 = vector.broadcast %2 : f32 to vector<8x128xf32>
    %392 = arith.mulf %391, %390 : vector<8x128xf32>
    %393 = arith.addf %388, %392 : vector<8x128xf32>
    %394 = arith.maximumf %379, %393 : vector<8x128xf32>
    %c26_212 = arith.constant 26 : index
    %c0_213 = arith.constant 0 : index
    %c0_214 = arith.constant 0 : index
    %395 = vector.load %arg1[%c26_212, %c0_213, %c0_214] : memref<30x8x128xf32, #tpu.memory_space<vmem>>, vector<1x8x128xf32>
    %396 = vector.shape_cast %395 : vector<1x8x128xf32> to vector<8x128xf32>
    %397 = vector.broadcast %0 : f32 to vector<8x128xf32>
    %398 = arith.mulf %397, %396 : vector<8x128xf32>
    %c27_215 = arith.constant 27 : index
    %c0_216 = arith.constant 0 : index
    %c0_217 = arith.constant 0 : index
    %399 = vector.load %arg1[%c27_215, %c0_216, %c0_217] : memref<30x8x128xf32, #tpu.memory_space<vmem>>, vector<1x8x128xf32>
    %400 = vector.shape_cast %399 : vector<1x8x128xf32> to vector<8x128xf32>
    %401 = vector.broadcast %1 : f32 to vector<8x128xf32>
    %402 = arith.mulf %401, %400 : vector<8x128xf32>
    %403 = arith.addf %398, %402 : vector<8x128xf32>
    %c28 = arith.constant 28 : index
    %c0_218 = arith.constant 0 : index
    %c0_219 = arith.constant 0 : index
    %404 = vector.load %arg1[%c28, %c0_218, %c0_219] : memref<30x8x128xf32, #tpu.memory_space<vmem>>, vector<1x8x128xf32>
    %405 = vector.shape_cast %404 : vector<1x8x128xf32> to vector<8x128xf32>
    %406 = vector.broadcast %2 : f32 to vector<8x128xf32>
    %407 = arith.mulf %406, %405 : vector<8x128xf32>
    %408 = arith.addf %403, %407 : vector<8x128xf32>
    %409 = arith.maximumf %394, %408 : vector<8x128xf32>
    %c27_220 = arith.constant 27 : index
    %c0_221 = arith.constant 0 : index
    %c0_222 = arith.constant 0 : index
    %410 = vector.load %arg1[%c27_220, %c0_221, %c0_222] : memref<30x8x128xf32, #tpu.memory_space<vmem>>, vector<1x8x128xf32>
    %411 = vector.shape_cast %410 : vector<1x8x128xf32> to vector<8x128xf32>
    %412 = vector.broadcast %0 : f32 to vector<8x128xf32>
    %413 = arith.mulf %412, %411 : vector<8x128xf32>
    %c28_223 = arith.constant 28 : index
    %c0_224 = arith.constant 0 : index
    %c0_225 = arith.constant 0 : index
    %414 = vector.load %arg1[%c28_223, %c0_224, %c0_225] : memref<30x8x128xf32, #tpu.memory_space<vmem>>, vector<1x8x128xf32>
    %415 = vector.shape_cast %414 : vector<1x8x128xf32> to vector<8x128xf32>
    %416 = vector.broadcast %1 : f32 to vector<8x128xf32>
    %417 = arith.mulf %416, %415 : vector<8x128xf32>
    %418 = arith.addf %413, %417 : vector<8x128xf32>
    %c29 = arith.constant 29 : index
    %c0_226 = arith.constant 0 : index
    %c0_227 = arith.constant 0 : index
    %419 = vector.load %arg1[%c29, %c0_226, %c0_227] : memref<30x8x128xf32, #tpu.memory_space<vmem>>, vector<1x8x128xf32>
    %420 = vector.shape_cast %419 : vector<1x8x128xf32> to vector<8x128xf32>
    %421 = vector.broadcast %2 : f32 to vector<8x128xf32>
    %422 = arith.mulf %421, %420 : vector<8x128xf32>
    %423 = arith.addf %418, %422 : vector<8x128xf32>
    %424 = arith.maximumf %409, %423 : vector<8x128xf32>
    %c0_228 = arith.constant 0 : index
    %c0_229 = arith.constant 0 : index
    %425 = vector.load %arg7[%c0_228, %c0_229] : memref<24x128xf32, #tpu.memory_space<vmem>>, vector<8x128xf32>
    tpu.vector_store %arg7[%c0_228, %c0_229], %424 {strides = array<i32>} : memref<24x128xf32, #tpu.memory_space<vmem>>, vector<8x128xf32>,
    %c23_230 = arith.constant 23 : index
    %c0_231 = arith.constant 0 : index
    %c0_232 = arith.constant 0 : index
    %426 = vector.load %arg1[%c23_230, %c0_231, %c0_232] : memref<30x8x128xf32, #tpu.memory_space<vmem>>, vector<1x8x128xf32>
    %427 = vector.shape_cast %426 : vector<1x8x128xf32> to vector<8x128xf32>
    %428 = vector.broadcast %3 : f32 to vector<8x128xf32>
    %429 = arith.mulf %428, %427 : vector<8x128xf32>
    %c24_233 = arith.constant 24 : index
    %c0_234 = arith.constant 0 : index
    %c0_235 = arith.constant 0 : index
    %430 = vector.load %arg1[%c24_233, %c0_234, %c0_235] : memref<30x8x128xf32, #tpu.memory_space<vmem>>, vector<1x8x128xf32>
    %431 = vector.shape_cast %430 : vector<1x8x128xf32> to vector<8x128xf32>
    %432 = vector.broadcast %4 : f32 to vector<8x128xf32>
    %433 = arith.mulf %432, %431 : vector<8x128xf32>
    %434 = arith.addf %429, %433 : vector<8x128xf32>
    %c25_236 = arith.constant 25 : index
    %c0_237 = arith.constant 0 : index
    %c0_238 = arith.constant 0 : index
    %435 = vector.load %arg1[%c25_236, %c0_237, %c0_238] : memref<30x8x128xf32, #tpu.memory_space<vmem>>, vector<1x8x128xf32>
    %436 = vector.shape_cast %435 : vector<1x8x128xf32> to vector<8x128xf32>
    %437 = vector.broadcast %5 : f32 to vector<8x128xf32>
    %438 = arith.mulf %437, %436 : vector<8x128xf32>
    %439 = arith.addf %434, %438 : vector<8x128xf32>
    %c24_239 = arith.constant 24 : index
    %c0_240 = arith.constant 0 : index
    %c0_241 = arith.constant 0 : index
    %440 = vector.load %arg1[%c24_239, %c0_240, %c0_241] : memref<30x8x128xf32, #tpu.memory_space<vmem>>, vector<1x8x128xf32>
    %441 = vector.shape_cast %440 : vector<1x8x128xf32> to vector<8x128xf32>
    %442 = vector.broadcast %3 : f32 to vector<8x128xf32>
    %443 = arith.mulf %442, %441 : vector<8x128xf32>
    %c25_242 = arith.constant 25 : index
    %c0_243 = arith.constant 0 : index
    %c0_244 = arith.constant 0 : index
    %444 = vector.load %arg1[%c25_242, %c0_243, %c0_244] : memref<30x8x128xf32, #tpu.memory_space<vmem>>, vector<1x8x128xf32>
    %445 = vector.shape_cast %444 : vector<1x8x128xf32> to vector<8x128xf32>
    %446 = vector.broadcast %4 : f32 to vector<8x128xf32>
    %447 = arith.mulf %446, %445 : vector<8x128xf32>
    %448 = arith.addf %443, %447 : vector<8x128xf32>
    %c26_245 = arith.constant 26 : index
    %c0_246 = arith.constant 0 : index
    %c0_247 = arith.constant 0 : index
    %449 = vector.load %arg1[%c26_245, %c0_246, %c0_247] : memref<30x8x128xf32, #tpu.memory_space<vmem>>, vector<1x8x128xf32>
    %450 = vector.shape_cast %449 : vector<1x8x128xf32> to vector<8x128xf32>
    %451 = vector.broadcast %5 : f32 to vector<8x128xf32>
    %452 = arith.mulf %451, %450 : vector<8x128xf32>
    %453 = arith.addf %448, %452 : vector<8x128xf32>
    %454 = arith.maximumf %439, %453 : vector<8x128xf32>
    %c25_248 = arith.constant 25 : index
    %c0_249 = arith.constant 0 : index
    %c0_250 = arith.constant 0 : index
    %455 = vector.load %arg1[%c25_248, %c0_249, %c0_250] : memref<30x8x128xf32, #tpu.memory_space<vmem>>, vector<1x8x128xf32>
    %456 = vector.shape_cast %455 : vector<1x8x128xf32> to vector<8x128xf32>
    %457 = vector.broadcast %3 : f32 to vector<8x128xf32>
    %458 = arith.mulf %457, %456 : vector<8x128xf32>
    %c26_251 = arith.constant 26 : index
    %c0_252 = arith.constant 0 : index
    %c0_253 = arith.constant 0 : index
    %459 = vector.load %arg1[%c26_251, %c0_252, %c0_253] : memref<30x8x128xf32, #tpu.memory_space<vmem>>, vector<1x8x128xf32>
    %460 = vector.shape_cast %459 : vector<1x8x128xf32> to vector<8x128xf32>
    %461 = vector.broadcast %4 : f32 to vector<8x128xf32>
    %462 = arith.mulf %461, %460 : vector<8x128xf32>
    %463 = arith.addf %458, %462 : vector<8x128xf32>
    %c27_254 = arith.constant 27 : index
    %c0_255 = arith.constant 0 : index
    %c0_256 = arith.constant 0 : index
    %464 = vector.load %arg1[%c27_254, %c0_255, %c0_256] : memref<30x8x128xf32, #tpu.memory_space<vmem>>, vector<1x8x128xf32>
    %465 = vector.shape_cast %464 : vector<1x8x128xf32> to vector<8x128xf32>
    %466 = vector.broadcast %5 : f32 to vector<8x128xf32>
    %467 = arith.mulf %466, %465 : vector<8x128xf32>
    %468 = arith.addf %463, %467 : vector<8x128xf32>
    %469 = arith.maximumf %454, %468 : vector<8x128xf32>
    %c26_257 = arith.constant 26 : index
    %c0_258 = arith.constant 0 : index
    %c0_259 = arith.constant 0 : index
    %470 = vector.load %arg1[%c26_257, %c0_258, %c0_259] : memref<30x8x128xf32, #tpu.memory_space<vmem>>, vector<1x8x128xf32>
    %471 = vector.shape_cast %470 : vector<1x8x128xf32> to vector<8x128xf32>
    %472 = vector.broadcast %3 : f32 to vector<8x128xf32>
    %473 = arith.mulf %472, %471 : vector<8x128xf32>
    %c27_260 = arith.constant 27 : index
    %c0_261 = arith.constant 0 : index
    %c0_262 = arith.constant 0 : index
    %474 = vector.load %arg1[%c27_260, %c0_261, %c0_262] : memref<30x8x128xf32, #tpu.memory_space<vmem>>, vector<1x8x128xf32>
    %475 = vector.shape_cast %474 : vector<1x8x128xf32> to vector<8x128xf32>
    %476 = vector.broadcast %4 : f32 to vector<8x128xf32>
    %477 = arith.mulf %476, %475 : vector<8x128xf32>
    %478 = arith.addf %473, %477 : vector<8x128xf32>
    %c28_263 = arith.constant 28 : index
    %c0_264 = arith.constant 0 : index
    %c0_265 = arith.constant 0 : index
    %479 = vector.load %arg1[%c28_263, %c0_264, %c0_265] : memref<30x8x128xf32, #tpu.memory_space<vmem>>, vector<1x8x128xf32>
    %480 = vector.shape_cast %479 : vector<1x8x128xf32> to vector<8x128xf32>
    %481 = vector.broadcast %5 : f32 to vector<8x128xf32>
    %482 = arith.mulf %481, %480 : vector<8x128xf32>
    %483 = arith.addf %478, %482 : vector<8x128xf32>
    %484 = arith.maximumf %469, %483 : vector<8x128xf32>
    %c27_266 = arith.constant 27 : index
    %c0_267 = arith.constant 0 : index
    %c0_268 = arith.constant 0 : index
    %485 = vector.load %arg1[%c27_266, %c0_267, %c0_268] : memref<30x8x128xf32, #tpu.memory_space<vmem>>, vector<1x8x128xf32>
    %486 = vector.shape_cast %485 : vector<1x8x128xf32> to vector<8x128xf32>
    %487 = vector.broadcast %3 : f32 to vector<8x128xf32>
    %488 = arith.mulf %487, %486 : vector<8x128xf32>
    %c28_269 = arith.constant 28 : index
    %c0_270 = arith.constant 0 : index
    %c0_271 = arith.constant 0 : index
    %489 = vector.load %arg1[%c28_269, %c0_270, %c0_271] : memref<30x8x128xf32, #tpu.memory_space<vmem>>, vector<1x8x128xf32>
    %490 = vector.shape_cast %489 : vector<1x8x128xf32> to vector<8x128xf32>
    %491 = vector.broadcast %4 : f32 to vector<8x128xf32>
    %492 = arith.mulf %491, %490 : vector<8x128xf32>
    %493 = arith.addf %488, %492 : vector<8x128xf32>
    %c29_272 = arith.constant 29 : index
    %c0_273 = arith.constant 0 : index
    %c0_274 = arith.constant 0 : index
    %494 = vector.load %arg1[%c29_272, %c0_273, %c0_274] : memref<30x8x128xf32, #tpu.memory_space<vmem>>, vector<1x8x128xf32>
    %495 = vector.shape_cast %494 : vector<1x8x128xf32> to vector<8x128xf32>
    %496 = vector.broadcast %5 : f32 to vector<8x128xf32>
    %497 = arith.mulf %496, %495 : vector<8x128xf32>
    %498 = arith.addf %493, %497 : vector<8x128xf32>
    %499 = arith.maximumf %484, %498 : vector<8x128xf32>
    %c8_275 = arith.constant 8 : index
    %c0_276 = arith.constant 0 : index
    %500 = vector.load %arg7[%c8_275, %c0_276] : memref<24x128xf32, #tpu.memory_space<vmem>>, vector<8x128xf32>
    tpu.vector_store %arg7[%c8_275, %c0_276], %499 {strides = array<i32>} : memref<24x128xf32, #tpu.memory_space<vmem>>, vector<8x128xf32>,
    %c29_277 = arith.constant 29 : index
    %c0_278 = arith.constant 0 : index
    %c0_279 = arith.constant 0 : index
    %501 = vector.load %arg1[%c29_277, %c0_278, %c0_279] : memref<30x8x128xf32, #tpu.memory_space<vmem>>, vector<1x8x128xf32>
    %502 = vector.shape_cast %501 : vector<1x8x128xf32> to vector<8x128xf32>
    %c16_280 = arith.constant 16 : index
    %c0_281 = arith.constant 0 : index
    %503 = vector.load %arg7[%c16_280, %c0_281] : memref<24x128xf32, #tpu.memory_space<vmem>>, vector<8x128xf32>
    tpu.vector_store %arg7[%c16_280, %c0_281], %502 {strides = array<i32>} : memref<24x128xf32, #tpu.memory_space<vmem>>, vector<8x128xf32>,
    %c0_282 = arith.constant 0 : index
    %c0_283 = arith.constant 0 : index
    %504 = vector.load %arg4[%c0_282, %c0_283] : memref<32x24xf32, #tpu.memory_space<vmem>>, vector<32x24xf32>
    %c0_284 = arith.constant 0 : index
    %c0_285 = arith.constant 0 : index
    %505 = vector.load %arg7[%c0_284, %c0_285] : memref<24x128xf32, #tpu.memory_space<vmem>>, vector<24x128xf32>
    %cst = arith.constant dense<0.000000e+00> : vector<32x128xf32>
    %506 = tpu.matmul %504, %505, %cst {dimension_numbers = #tpu.dot_dimension_numbers<[1], [0], [0], [1], [0, 0, 1, 1], [], []>} : vector<32x24xf32>, vector<24x128xf32>, vector<32x128xf32> -> vector<32x128xf32>
    %507 = math.tanh %506 : vector<32x128xf32>
    %c0_286 = arith.constant 0 : index
    %c0_287 = arith.constant 0 : index
    %508 = vector.load %arg5[%c0_286, %c0_287] : memref<1x32xf32, #tpu.memory_space<vmem>>, vector<1x32xf32>
    %cst_288 = arith.constant dense<0.000000e+00> : vector<1x128xf32>
    %509 = tpu.matmul %508, %507, %cst_288 {dimension_numbers = #tpu.dot_dimension_numbers<[1], [0], [0], [1], [0, 0, 1, 1], [], []>} : vector<1x32xf32>, vector<32x128xf32>, vector<1x128xf32> -> vector<1x128xf32>
    %c0_289 = arith.constant 0 : index
    %c0_290 = arith.constant 0 : index
    %510 = vector.load %arg6[%c0_289, %c0_290] : memref<1x128xf32, #tpu.memory_space<vmem>>, vector<1x128xf32>
    tpu.vector_store %arg6[%c0_289, %c0_290], %509 {strides = array<i32>} : memref<1x128xf32, #tpu.memory_space<vmem>>, vector<1x128xf32>,
    return
  }
  func.func @transform_0(%arg0: i32) -> (i32, i32, i32) {
    %c0_i32 = arith.constant 0 : i32
    %c0_i32_0 = arith.constant 0 : i32
    %c0_i32_1 = arith.constant 0 : i32
    return %c0_i32, %c0_i32_0, %arg0 : i32, i32, i32
  }
  func.func @transform_1(%arg0: i32) -> i32 {
    %c0_i32 = arith.constant 0 : i32
    %c0_i32_0 = arith.constant 0 : i32
    return %c0_i32 : i32
  }
  func.func @transform_2(%arg0: i32) -> i32 {
    %c0_i32 = arith.constant 0 : i32
    %c0_i32_0 = arith.constant 0 : i32
    return %c0_i32 : i32
  }
  func.func @transform_3(%arg0: i32) -> (i32, i32) {
    %c0_i32 = arith.constant 0 : i32
    %c0_i32_0 = arith.constant 0 : i32
    %c0_i32_1 = arith.constant 0 : i32
    return %c0_i32, %c0_i32_0 : i32, i32
  }
  func.func @transform_4(%arg0: i32) -> (i32, i32) {
    %c0_i32 = arith.constant 0 : i32
    %c0_i32_0 = arith.constant 0 : i32
    %c0_i32_1 = arith.constant 0 : i32
    return %c0_i32, %c0_i32_0 : i32, i32
  }
  func.func @transform_5(%arg0: i32) -> (i32, i32) {
    %c0_i32 = arith.constant 0 : i32
    %c0_i32_0 = arith.constant 0 : i32
    return %c0_i32, %arg0 : i32, i32
  }
}

</mosaic_0001>

<bundles_post_ra>
// kernel: ebcnn_forward_teb.1
= control target key start
LH: loop header
LB: loop body
LE: loop exit
PB: predicated region body
PF: predicated region fallthrough
CT: control target
= control target key end

     0   :  { %10 = vsyncpa [#allocation4], 0  ;;  %s898_s0 = inlined_call_operand.vmem [shape: f32[30,8,128], index: 0, kind: input, shape index: {}]   ;;  %s899_s1 = inlined_call_operand.vmem [shape: f32[3], index: 1, kind: input, shape index: {}]   ;;  %s900_s2 = inlined_call_operand.vmem [shape: f32[3], index: 2, kind: input, shape index: {}]   ;;  %s901_s3 = inlined_call_operand.vmem [shape: f32[32,24], index: 3, kind: input, shape index: {}]   ;;  %s902_s4 = inlined_call_operand.vmem [shape: f32[1,32], index: 4, kind: input, shape index: {}]   ;;  %s903_s5 = inlined_call_operand.vmem [shape: f32[1,128], index: 5, kind: output, shape index: {}]  }
   0x1   :  { %s20_s20 = sshll.u32 %s899_s1, 4  ;;  %s21_s20 = int_to_ptr.vmem [resolvable:$true] %s20_s20 }
   0x2   :  { %11 = vsyncpa [#allocation6], 0  ;;  %s30_s23 = sshll.u32 %s900_s2, 4  ;;  %s618_s24 = scalar_lea.vmem %s21_s20, 16  ;;  %s31_s23 = int_to_ptr.vmem [resolvable:$true] %s30_s23 }
   0x3   :  { %p619_p0 = scmp.ne.s32.totalorder %s21_s20, %s618_s24  ;;  %p623_p1 = scmp.lt.s32.totalorder %s21_s20, %s21_s20 }
   0x4   :  { %p624_p2 = scmp.lt.s32.totalorder %s618_s24, %s618_s24 }
   0x6   :  { %p625_p3 = por %p624_p2, %p623_p1 }
   0x8   :  { %p626_p4 = pnand %p625_p3, %p619_p0 }
   0xa   :  { %629 = shalt.err (!%p626_p4)
}
   0xb   :  { %s646_s25 = smov [#allocation3]   ;;  %s630_s26 = scalar_lea.vmem %s31_s23, 16 }
   0xc   :  { %23 = dma.vmem_to_smem %s21_s20, 16, %s646_s25, [#allocation4]  }
   0xd   :  { %p631_p5 = scmp.ne.s32.totalorder %s31_s23, %s630_s26  ;;  %p635_p6 = scmp.lt.s32.totalorder %s31_s23, %s31_s23 }
   0xe   :  { %p636_p7 = scmp.lt.s32.totalorder %s630_s26, %s630_s26 }
  0x10   :  { %p637_p8 = por %p636_p7, %p635_p6 }
  0x12   :  { %p638_p9 = pnand %p637_p8, %p631_p5 }
  0x14   :  { %641 = shalt.err (!%p638_p9)
}
  0x15   :  { %s647_s1 = smov [#allocation5]  }
  0x16   :  { %33 = dma.vmem_to_smem %s31_s23, 16, %s647_s1, [#allocation6]  }
  0x17   :  { %642 = dma.done.wait [#allocation4], 16  }
  0x18   :  { %643 = vsyncadd [#allocation4], 4294967280 }
  0x19   :  { %644 = dma.done.wait [#allocation6], 16  }
  0x1a   :  { %645 = vsyncadd [#allocation6], 4294967280 }
  0x1b   :  { %44 = sfence }
  0x1c   :  { %s45_s2 = sld [smem:[#allocation3]]  ;;  %s514_s27 = sld [smem:[#allocation3 + $0x1]]  ;;  %v51_v0 = vld [vmem:[%s898_s0] sm:$0xff]  ;;  %v518_v1 = vld [vmem:[%s898_s0 + $0x8] sm:$0xff]  ;;  %v519_v2 = vld [vmem:[%s898_s0 + $0x10] sm:$0xff]  ;;  %vm330_vm0 = vcmask 195584  }
  0x1d   :  { %s515_s28 = sld [smem:[#allocation3 + $0x2]]  ;;  %v520_v3 = vld [vmem:[%s898_s0 + $0x18] sm:$0xff]  ;;  %v521_v6 = vld [vmem:[%s898_s0 + $0x20] sm:$0xff]  ;;  %v522_v11 = vld [vmem:[%s898_s0 + $0x28] sm:$0xff]  ;;  %vm649_vm1 = vmmov 0   ;;  %vm433_vm2 = vcmask 261120  }
  0x1e   :  { %v523_v16 = vld [vmem:[%s898_s0 + $0x30] sm:$0xff]  ;;  %v524_v25 = vld [vmem:[%s898_s0 + $0x38] sm:$0xff]  ;;  %v323_v30 = vld [vmem:[%s901_s3] sm:$0xff]  ;;  %s843_s29 = sld [smem:[#allocation5 + $0x2]] }
  0x1f   :  { %v525_v35 = vld [vmem:[%s898_s0 + $0x40] sm:$0xff]  ;;  %578 = vmatprep.mubr.msk.f32.mxu0 %vm330_vm0, %v323_v30  ;;  %v526_v44 = vld [vmem:[%s898_s0 + $0x48] sm:$0xff]  ;;  %v527_v48 = vld [vmem:[%s898_s0 + $0x50] sm:$0xff] }
  0x20   :  { %v528_v56 = vld [vmem:[%s898_s0 + $0x58] sm:$0xff]  ;;  %v529_v63 = vld [vmem:[%s898_s0 + $0x60] sm:$0xff] }
  0x22   :  { %v699_v4 = vstv %s45_s2  ;;  %v701_v5 = vstv %s514_s27  ;;  %s836_s27 = sld [smem:[#allocation5]] }
  0x23   :  { %v53_v7 = vmul.f32 %v699_v4, %v51_v0  ;;  %v57_v8 = vmul.f32 %v518_v1, %v701_v5  ;;  %v708_v9 = vstv %s515_s28  ;;  %v64_v10 = vmul.f32 %v518_v1, %v699_v4  ;;  %s838_s28 = sld [smem:[#allocation5 + $0x1]] }
  0x24   :  { %v62_v12 = vmul.f32 %v519_v2, %v708_v9  ;;  %v65_v13 = vmul.f32 %v519_v2, %v701_v5  ;;  %v69_v14 = vmul.f32 %v520_v3, %v708_v9  ;;  %v72_v15 = vmul.f32 %v519_v2, %v699_v4 }
  0x25   :  { %v58_v17 = vadd.f32 %v57_v8, %v53_v7  ;;  %v73_v18 = vmul.f32 %v520_v3, %v701_v5  ;;  %v77_v19 = vmul.f32 %v521_v6, %v708_v9  ;;  %v80_v20 = vmul.f32 %v520_v3, %v699_v4 }
  0x26   :  { %v66_v21 = vadd.f32 %v65_v13, %v64_v10  ;;  %v81_v22 = vmul.f32 %v521_v6, %v701_v5  ;;  %v85_v23 = vmul.f32 %v522_v11, %v708_v9  ;;  %v88_v24 = vmul.f32 %v521_v6, %v699_v4  ;;  %v530_v6 = vld [vmem:[%s898_s0 + $0x68] sm:$0xff] }
  0x27   :  { %v63_v26 = vadd.f32 %v62_v12, %v58_v17  ;;  %v74_v27 = vadd.f32 %v73_v18, %v72_v15  ;;  %v89_v28 = vmul.f32 %v522_v11, %v701_v5  ;;  %v93_v29 = vmul.f32 %v523_v16, %v708_v9 }
  0x28   :  { %v70_v31 = vadd.f32 %v69_v14, %v66_v21  ;;  %v82_v32 = vadd.f32 %v81_v22, %v80_v20  ;;  %v96_v33 = vmul.f32 %v522_v11, %v699_v4  ;;  %v97_v34 = vmul.f32 %v523_v16, %v701_v5  ;;  %v531_v11 = vld [vmem:[%s898_s0 + $0x70] sm:$0xff] }
  0x29   :  { %v78_v36 = vadd.f32 %v77_v19, %v74_v27  ;;  %v90_v37 = vadd.f32 %v89_v28, %v88_v24  ;;  %v101_v38 = vmul.f32 %v524_v25, %v708_v9  ;;  %v104_v39 = vmul.f32 %v523_v16, %v699_v4  ;;  %v532_v16 = vld [vmem:[%s898_s0 + $0x78] sm:$0xff]  ;;  %v533_v24 = vld [vmem:[%s898_s0 + $0x80] sm:$0xff] }
  0x2a   :  { %v71_v40 = vmax.f32 %v63_v26, %v70_v31  ;;  %v86_v41 = vadd.f32 %v85_v23, %v82_v32  ;;  %v98_v42 = vadd.f32 %v97_v34, %v96_v33  ;;  %v105_v43 = vmul.f32 %v524_v25, %v701_v5 }
  0x2b   :  { %v109_v45 = vmul.f32 %v525_v35, %v708_v9  ;;  %v112_v46 = vmul.f32 %v524_v25, %v699_v4  ;;  %v113_v47 = vmul.f32 %v525_v35, %v701_v5  ;;  %v94_v50 = vadd.f32 %v93_v29, %v90_v37  ;;  %v534_v37 = vld [vmem:[%s898_s0 + $0x88] sm:$0xff] }
  0x2c   :  { %v79_v49 = vmax.f32 %v71_v40, %v78_v36  ;;  %v106_v51 = vadd.f32 %v105_v43, %v104_v39  ;;  %v117_v53 = vmul.f32 %v526_v44, %v708_v9  ;;  %v120_v54 = vmul.f32 %v525_v35, %v699_v4 }
  0x2d   :  { %v114_v52 = vadd.f32 %v113_v47, %v112_v46  ;;  %v121_v55 = vmul.f32 %v526_v44, %v701_v5  ;;  %v102_v58 = vadd.f32 %v101_v38, %v98_v42  ;;  %v128_v59 = vmul.f32 %v526_v44, %v699_v4  ;;  %v535_v42 = vld [vmem:[%s898_s0 + $0x90] sm:$0xff]  ;;  %v536_v47 = vld [vmem:[%s898_s0 + $0x98] sm:$0xff] }
  0x2e   :  { %v87_v57 = vmax.f32 %v79_v49, %v86_v41  ;;  %v129_v60 = vmul.f32 %v527_v48, %v701_v5  ;;  %v110_v61 = vadd.f32 %v109_v45, %v106_v51  ;;  %v125_v62 = vmul.f32 %v527_v48, %v708_v9 }
  0x2f   :  { %v122_v1 = vadd.f32 %v121_v55, %v120_v54  ;;  %v136_v2 = vmul.f32 %v527_v48, %v699_v4  ;;  %v137_v3 = vmul.f32 %v528_v56, %v701_v5  ;;  %v118_v7 = vadd.f32 %v117_v53, %v114_v52  ;;  %v537_v52 = vld [vmem:[%s898_s0 + $0xa0] sm:$0xff]  ;;  %v538_v53 = vld [vmem:[%s898_s0 + $0xa8] sm:$0xff] }
  0x30   :  { %v95_v0 = vmax.f32 %v87_v57, %v94_v50  ;;  %v130_v8 = vadd.f32 %v129_v60, %v128_v59  ;;  %v133_v10 = vmul.f32 %v528_v56, %v708_v9  ;;  %v144_v13 = vmul.f32 %v528_v56, %v699_v4 }
  0x31   :  { %v145_v14 = vmul.f32 %v529_v63, %v701_v5  ;;  %v152_v15 = vmul.f32 %v529_v63, %v699_v4  ;;  %v141_v17 = vmul.f32 %v529_v63, %v708_v9  ;;  %v153_v18 = vmul.f32 %v530_v6, %v701_v5 }
  0x32   :  { %v103_v12 = vmax.f32 %v95_v0, %v102_v58  ;;  %v160_v19 = vmul.f32 %v530_v6, %v699_v4  ;;  %v126_v21 = vadd.f32 %v125_v62, %v122_v1  ;;  %v138_v22 = vadd.f32 %v137_v3, %v136_v2  ;;  %v539_v58 = vld [vmem:[%s898_s0 + $0xb0] sm:$0xff]  ;;  %v540_v3 = vld [vmem:[%s898_s0 + $0xb8] sm:$0xff] }
  0x33   :  { %v161_v23 = vmul.f32 %v531_v11, %v701_v5  ;;  %v134_v25 = vadd.f32 %v133_v10, %v130_v8  ;;  %v149_v26 = vmul.f32 %v530_v6, %v708_v9  ;;  %v168_v27 = vmul.f32 %v531_v11, %v699_v4 }
  0x34   :  { %v111_v20 = vmax.f32 %v103_v12, %v110_v61  ;;  %v169_v28 = vmul.f32 %v532_v16, %v701_v5  ;;  %v146_v30 = vadd.f32 %v145_v14, %v144_v13  ;;  %v154_v31 = vadd.f32 %v153_v18, %v152_v15  ;;  %v541_v15 = vld [vmem:[%s898_s0 + $0xc0] sm:$0xff] }
  0x35   :  { %v157_v32 = vmul.f32 %v531_v11, %v708_v9  ;;  %v162_v33 = vadd.f32 %v161_v23, %v160_v19  ;;  %v165_v34 = vmul.f32 %v532_v16, %v708_v9  ;;  %v173_v36 = vmul.f32 %v533_v24, %v708_v9 }
  0x36   :  { %v119_v29 = vmax.f32 %v111_v20, %v118_v7  ;;  %v170_v35 = vadd.f32 %v169_v28, %v168_v27  ;;  %v142_v39 = vadd.f32 %v141_v17, %v138_v22  ;;  %v176_v40 = vmul.f32 %v532_v16, %v699_v4 }
  0x37   :  { %v177_v41 = vmul.f32 %v533_v24, %v701_v5  ;;  %v150_v44 = vadd.f32 %v149_v26, %v146_v30  ;;  %v158_v45 = vadd.f32 %v157_v32, %v154_v31  ;;  %v181_v46 = vmul.f32 %v534_v37, %v708_v9  ;;  %v542_v32 = vld [vmem:[%s898_s0 + $0xc8] sm:$0xff] }
  0x38   :  { %v127_v38 = vmax.f32 %v119_v29, %v126_v21  ;;  %v166_v48 = vadd.f32 %v165_v34, %v162_v33  ;;  %v174_v49 = vadd.f32 %v173_v36, %v170_v35  ;;  %v184_v50 = vmul.f32 %v533_v24, %v699_v4  ;;  %v543_v34 = vld [vmem:[%s898_s0 + $0xd0] sm:$0xff] }
  0x39   :  { %v185_v51 = vmul.f32 %v534_v37, %v701_v5  ;;  %v178_v55 = vadd.f32 %v177_v41, %v176_v40  ;;  %v189_v56 = vmul.f32 %v535_v42, %v708_v9  ;;  %v192_v57 = vmul.f32 %v534_v37, %v699_v4 }
  0x3a   :  { %v135_v43 = vmax.f32 %v127_v38, %v134_v25  ;;  %v193_v59 = vmul.f32 %v535_v42, %v701_v5  ;;  %v200_v60 = vmul.f32 %v535_v42, %v699_v4  ;;  %v201_v61 = vmul.f32 %v536_v47, %v701_v5 }
  0x3b   :  { %v208_v62 = vmul.f32 %v536_v47, %v699_v4  ;;  %v209_v0 = vmul.f32 %v537_v52, %v701_v5  ;;  %v216_v1 = vmul.f32 %v537_v52, %v699_v4  ;;  %v217_v2 = vmul.f32 %v538_v53, %v701_v5 }
  0x3c   :  { %v143_v54 = vmax.f32 %v135_v43, %v142_v39  ;;  %v186_v6 = vadd.f32 %v185_v51, %v184_v50  ;;  %v197_v7 = vmul.f32 %v536_v47, %v708_v9  ;;  %v224_v8 = vmul.f32 %v538_v53, %v699_v4  ;;  %v544_v43 = vld [vmem:[%s898_s0 + $0xd8] sm:$0xff] }
  0x3d   :  { %v225_v10 = vmul.f32 %v539_v58, %v701_v5  ;;  %v182_v12 = vadd.f32 %v181_v46, %v178_v55  ;;  %v205_v13 = vmul.f32 %v537_v52, %v708_v9  ;;  %v232_v14 = vmul.f32 %v539_v58, %v699_v4 }
  0x3e   :  { %v151_v63 = vmax.f32 %v143_v54, %v150_v44  ;;  %v194_v16 = vadd.f32 %v193_v59, %v192_v57  ;;  %v202_v17 = vadd.f32 %v201_v61, %v200_v60  ;;  %v213_v18 = vmul.f32 %v538_v53, %v708_v9 }
  0x3f   :  { %v233_v19 = vmul.f32 %v540_v3, %v701_v5  ;;  %v210_v21 = vadd.f32 %v209_v0, %v208_v62  ;;  %v218_v22 = vadd.f32 %v217_v2, %v216_v1  ;;  %v221_v23 = vmul.f32 %v539_v58, %v708_v9  ;;  %v545_v0 = vld [vmem:[%s898_s0 + $0xe0] sm:$0xff] }
  0x40   :  { %v159_v11 = vmax.f32 %v151_v63, %v158_v45  ;;  %v190_v24 = vadd.f32 %v189_v56, %v186_v6  ;;  %v226_v25 = vadd.f32 %v225_v10, %v224_v8  ;;  %v229_v26 = vmul.f32 %v540_v3, %v708_v9 }
  0x41   :  { %v237_v27 = vmul.f32 %v541_v15, %v708_v9  ;;  %v234_v29 = vadd.f32 %v233_v19, %v232_v14  ;;  %v240_v30 = vmul.f32 %v540_v3, %v699_v4  ;;  %v241_v31 = vmul.f32 %v541_v15, %v701_v5 }
  0x42   :  { %v167_v20 = vmax.f32 %v159_v11, %v166_v48  ;;  %v198_v33 = vadd.f32 %v197_v7, %v194_v16  ;;  %v206_v36 = vadd.f32 %v205_v13, %v202_v17  ;;  %v214_v37 = vadd.f32 %v213_v18, %v210_v21  ;;  %v546_v17 = vld [vmem:[%s898_s0 + $0xe8] sm:$0xff] }
  0x43   :  { %v222_v38 = vadd.f32 %v221_v23, %v218_v22  ;;  %v230_v39 = vadd.f32 %v229_v26, %v226_v25  ;;  %v245_v40 = vmul.f32 %v542_v32, %v708_v9  ;;  %v248_v41 = vmul.f32 %v541_v15, %v699_v4 }
  0x44   :  { %v175_v28 = vmax.f32 %v167_v20, %v174_v49  ;;  %v249_v42 = vmul.f32 %v542_v32, %v701_v5  ;;  %v238_v45 = vadd.f32 %v237_v27, %v234_v29  ;;  %v242_v46 = vadd.f32 %v241_v31, %v240_v30 }
  0x45   :  { %v253_v47 = vmul.f32 %v543_v34, %v708_v9  ;;  %v256_v48 = vmul.f32 %v542_v32, %v699_v4  ;;  %v257_v49 = vmul.f32 %v543_v34, %v701_v5  ;;  %v282_v50 = vstv %s836_s27 }
  0x46   :  { %v183_v35 = vmax.f32 %v175_v28, %v182_v12  ;;  %v285_v51 = vstv %s838_s28  ;;  %v261_v53 = vmul.f32 %v544_v43, %v708_v9  ;;  %v283_v54 = vmul.f32 %v540_v3, %v282_v50 }
  0x47   :  { %v286_v55 = vmul.f32 %v541_v15, %v285_v51  ;;  %v250_v56 = vadd.f32 %v249_v42, %v248_v41  ;;  %v289_v57 = vstv %s843_s29  ;;  %v292_v58 = vmul.f32 %v541_v15, %v282_v50 }
  0x48   :  { %v191_v44 = vmax.f32 %v183_v35, %v190_v24  ;;  %v293_v59 = vmul.f32 %v542_v32, %v285_v51  ;;  %v264_v61 = vmul.f32 %v543_v34, %v699_v4  ;;  %v290_v63 = vmul.f32 %v542_v32, %v289_v57 }
  0x49   :  { %v287_v62 = vadd.f32 %v286_v55, %v283_v54  ;;  %v296_v2 = vmul.f32 %v543_v34, %v289_v57  ;;  %v299_v6 = vmul.f32 %v542_v32, %v282_v50  ;;  %v300_v7 = vmul.f32 %v543_v34, %v285_v51 }
  0x4a   :  { %v199_v52 = vmax.f32 %v191_v44, %v198_v33  ;;  %v294_v1 = vadd.f32 %v293_v59, %v292_v58  ;;  %v303_v10 = vmul.f32 %v544_v43, %v289_v57  ;;  %v306_v11 = vmul.f32 %v543_v34, %v282_v50 }
  0x4b   :  { %v291_v3 = vadd.f32 %v290_v63, %v287_v62  ;;  %v265_v12 = vmul.f32 %v544_v43, %v701_v5  ;;  %v301_v14 = vadd.f32 %v300_v7, %v299_v6  ;;  %v307_v15 = vmul.f32 %v544_v43, %v285_v51  ;;  %v432_v63 = vld [vmem:[%s902_s4] sm:$0x1] }
  0x4c   :  { %v207_v60 = vmax.f32 %v199_v52, %v206_v36  ;;  %v297_v13 = vadd.f32 %v296_v2, %v294_v1  ;;  %v310_v18 = vmul.f32 %v545_v0, %v289_v57  ;;  %v313_v19 = vmul.f32 %v544_v43, %v282_v50  ;;  %v326_v50 = vld [vmem:[%s901_s3 + $0x18] sm:$0xff] }
  0x4d   :  { %v314_v20 = vmul.f32 %v545_v0, %v285_v51  ;;  %v246_v21 = vadd.f32 %v245_v40, %v242_v46  ;;  %v304_v23 = vadd.f32 %v303_v10, %v301_v14  ;;  %v308_v24 = vadd.f32 %v307_v15, %v306_v11 }
  0x4e   :  { %v215_v8 = vmax.f32 %v207_v60, %v214_v37  ;;  %v298_v22 = vmax.f32 %v291_v3, %v297_v13  ;;  %v258_v26 = vadd.f32 %v257_v49, %v256_v48  ;;  %v272_v27 = vmul.f32 %v544_v43, %v699_v4 }
  0x4f   :  { %v273_v28 = vmul.f32 %v545_v0, %v701_v5  ;;  %v254_v29 = vadd.f32 %v253_v47, %v250_v56  ;;  %v266_v30 = vadd.f32 %v265_v12, %v264_v61  ;;  %v269_v31 = vmul.f32 %v545_v0, %v708_v9 }
  0x50   :  { %v223_v16 = vmax.f32 %v215_v8, %v222_v38  ;;  %v317_v32 = vmul.f32 %v546_v17, %v289_v57  ;;  %v305_v34 = vmax.f32 %v298_v22, %v304_v23  ;;  %v311_v35 = vadd.f32 %v310_v18, %v308_v24 }
  0x51   :  { %v315_v36 = vadd.f32 %v314_v20, %v313_v19  ;;  %v262_v38 = vadd.f32 %v261_v53, %v258_v26  ;;  %v274_v40 = vadd.f32 %v273_v28, %v272_v27  ;;  %v277_v41 = vmul.f32 %v546_v17, %v708_v9  ;;  %v325_v9 = vld [vmem:[%s901_s3 + $0x10] sm:$0xff] }
  0x52   :  { %v231_v25 = vmax.f32 %v223_v16, %v230_v39  ;;  %v270_v42 = vadd.f32 %v269_v31, %v266_v30  ;;  %v312_v44 = vmax.f32 %v305_v34, %v311_v35  ;;  %v648_v51 = vmov 0.0|0.0  }
  0x53   :  { %v318_v4 = vadd.f32 %v317_v32, %v315_v36  ;;  %v278_v5 = vadd.f32 %v277_v41, %v274_v40  ;;  %599 = vmatprep.subr.bf16.mxu1 %v648_v51  ;;  %v650_v52 = vmov 0.0  }
  0x54   :  { %v239_v33 = vmax.f32 %v231_v25, %v238_v45  ;;  %v324_v45 = vld [vmem:[%s901_s3 + $0x8] sm:$0xff]  ;;  %592 = vmatprep.mubr.msk.f32.mxu1 %vm649_vm1, %v650_v52 }
  0x55   :  { %v319_v47 = vmax.f32 %v312_v44, %v318_v4 }
  0x56   :  { %v247_v37 = vmax.f32 %v239_v33, %v246_v21 }
  0x58   :  { %v255_v39 = vmax.f32 %v247_v37, %v254_v29 }
  0x5a   :  { %v263_v43 = vmax.f32 %v255_v39, %v262_v38 }
  0x5c   :  { %v271_v46 = vmax.f32 %v263_v43, %v270_v42 }
  0x5e   :  { %v279_v48 = vmax.f32 %v271_v46, %v278_v5 }
  0x60   :  { %v595_v49 = vpack.c.bf16 %v319_v47, %v279_v48 }
  0x62   :  { %596 = vmatprep.subr.bf16.mxu0 %v595_v49 }
  0x63   :  { %598 = vmatpush3.bf16.msra.mxu0 %v595_v49 }
  0x64   :  { %576 = vmatprep.subr.mxu0 %v546_v17 }
  0x67   :  { %577 = vmatpush3.msra.mxu0 %v546_v17 }
  0x68   :  { %579 = vmatmul.mubr.msk.f32.vlgmr.msra.gmra.mrb[0].mxu0 %vm330_vm0, %v324_v45 }
  0x69   :  { %581 = vmatprep.mubr.msk.f32.mxu0 %vm330_vm0, %v325_v9 }
  0x6c   :  { %582 = vmatmul.mubr.msk.f32.gmra.mrb[2].mxu0 %vm330_vm0, %v326_v50 }
 0x13b   :  { %v580_v53 = vpop.f32.mrb[0].mxu0 }
 0x13c   :  { %610 = vtanh.f32 %v580_v53  ;;  %v409_v54 = vpop.f32.mrb[1].mxu0 }
 0x13d   :  { %612 = vtanh.f32 %v409_v54 }
 0x13f   :  { %v583_v55 = vpop.f32.mrb[2].mxu0 }
 0x140   :  { %614 = vtanh.f32 %v583_v55  ;;  %v419_v56 = vpop.f32.mrb[3].mxu0 }
 0x141   :  { %616 = vtanh.f32 %v419_v56 }
 0x146   :  { %v611_v57 = vpop.eup %610 }
 0x147   :  { %v613_v58 = vpop.eup %612 }
 0x148   :  { %v600_v59 = vpack.c.bf16 %v611_v57, %v613_v58 }
 0x14a   :  { %v615_v60 = vpop.eup %614  ;;  %601 = vmatpush3.bf16.msra.mxu1 %v600_v59 }
 0x14b   :  { %v617_v61 = vpop.eup %616  ;;  %602 = vmatprep.subr.bf16.mxu1 %v648_v51 }
 0x14c   :  { %v603_v62 = vpack.c.bf16 %v615_v60, %v617_v61 }
 0x14e   :  { %604 = vmatpush3.bf16.msra.mxu1 %v603_v62 }
 0x151   :  { %593 = vmatmul.mubr.msk.f32.vlgmr.msra.gmra.mrb[0].mxu1 %vm433_vm2, %v432_v63 }
 0x224   :  { %v503_v0 = vpop.f32.mrb[0].mxu1 }
 0x225   :  { %507 = vst [vmem:[%s903_s5] sm:$0x1] %v503_v0  ;;  %v594_v1 = vpop.f32.mrb[1].mxu1 }
 0x226   :  { %512 = vsyncpa [#allocation4], 1 }
 0x227   :  { %513 = vsyncpa [#allocation6], 1 }

</bundles_post_ra>
